<compile_context>
chip_gen: v7x
topology: tpu7x:2x2x1
jax: 0.10.0
libtpu: 0.0.40
codegen_flags: <defaults>
</compile_context>

<pallas_src>
import numpy as np
import jax
import jax.numpy as jnp
from jax.experimental import pallas as pl
from jax.experimental.pallas import tpu as pltpu


_TAIL_CHUNKS = 8  # extra hop-chunks streamed per tile to cover frame overlap


def _round_up(x: int, m: int) -> int:
    return ((x + m - 1) // m) * m


def _cdiv(a: int, b: int) -> int:
    return (a + b - 1) // b


# ----------------------------------------------------------------------------
# Deterministic parameter construction (replicates torch/torchaudio buffers)
# ----------------------------------------------------------------------------
def hann_window_periodic(win_length: int) -> np.ndarray:
    # torch.hann_window(win_length) (periodic=True default)
    n = np.arange(win_length, dtype=np.float64)
    return 0.5 * (1.0 - np.cos(2.0 * np.pi * n / win_length))


def _hz_to_mel_slaney(f):
    f = np.asarray(f, dtype=np.float64)
    f_sp = 200.0 / 3.0
    mels = f / f_sp
    min_log_hz = 1000.0
    min_log_mel = min_log_hz / f_sp
    logstep = np.log(6.4) / 27.0
    return np.where(
        f >= min_log_hz,
        min_log_mel + np.log(np.maximum(f, 1e-10) / min_log_hz) / logstep,
        mels,
    )


def _mel_to_hz_slaney(m):
    m = np.asarray(m, dtype=np.float64)
    f_sp = 200.0 / 3.0
    freqs = m * f_sp
    min_log_hz = 1000.0
    min_log_mel = min_log_hz / f_sp
    logstep = np.log(6.4) / 27.0
    return np.where(
        m >= min_log_mel,
        min_log_hz * np.exp(logstep * (m - min_log_mel)),
        freqs,
    )


def melscale_fbanks_slaney(n_freqs, f_min, f_max, n_mels, sample_rate) -> np.ndarray:
    # torchaudio.functional.melscale_fbanks(norm='slaney', mel_scale='slaney')
    # Shape: (n_freqs, n_mels), float64.
    all_freqs = np.linspace(0.0, sample_rate // 2, n_freqs)
    m_min = _hz_to_mel_slaney(f_min)
    m_max = _hz_to_mel_slaney(f_max)
    m_pts = np.linspace(m_min, m_max, n_mels + 2)
    f_pts = _mel_to_hz_slaney(m_pts)
    f_diff = f_pts[1:] - f_pts[:-1]                       # (n_mels+1,)
    slopes = f_pts[None, :] - all_freqs[:, None]          # (n_freqs, n_mels+2)
    down_slopes = (-1.0 * slopes[:, :-2]) / f_diff[:-1]   # (n_freqs, n_mels)
    up_slopes = slopes[:, 2:] / f_diff[1:]                # (n_freqs, n_mels)
    fb = np.maximum(0.0, np.minimum(down_slopes, up_slopes))
    enorm = 2.0 / (f_pts[2: n_mels + 2] - f_pts[:n_mels])
    return fb * enorm[None, :]


def windowed_rdft_matrices(n_fft: int, win_length: int):
    # Real/imag onesided DFT basis with the Hann window folded in (float64).
    # spec_re = frames @ b_re ; spec_im = frames @ b_im
    n_freqs = n_fft // 2 + 1
    window = hann_window_periodic(win_length)             # win_length == n_fft
    n = np.arange(n_fft, dtype=np.float64)[:, None]
    k = np.arange(n_freqs, dtype=np.float64)[None, :]
    ang = 2.0 * np.pi * n * k / n_fft
    b_re = window[:, None] * np.cos(ang)
    b_im = -window[:, None] * np.sin(ang)
    return b_re, b_im                                     # (n_fft, n_freqs) each


# ----------------------------------------------------------------------------
# Pallas kernel: per (batch, frame-tile) in-VMEM framing + STFT + mel + log
# ----------------------------------------------------------------------------
def _logmel_kernel(chunks_ref, tail_ref, basis_ref, fbt_ref, out_ref):
    # chunks_ref: (1, F_TILE, hop)    f32  hop-chunks of the padded waveform
    # tail_ref  : (1, 8, hop)         f32  next 8 hop-chunks (frame-overlap spill)
    # basis_ref : (n_fft, 2*nf)       compute dtype, [w*cos | -w*sin], Nyquist dropped
    # fbt_ref   : (n_mels, nf)        compute dtype, slaney fbank transposed
    # out_ref   : (1, n_mels, F_TILE) out dtype, log-mel with frames lane-dense
    _, f_tile, hop = chunks_ref.shape
    n_fft = basis_ref.shape[0]
    nf = basis_ref.shape[1] // 2
    n_hops = n_fft // hop

    # In-VMEM framing: frame f covers samples [f*hop, f*hop + n_fft), i.e.
    # hop-chunks [f, f + n_hops) of the slab.  No HBM frames array needed.
    slab = jnp.concatenate([chunks_ref[0], tail_ref[0]], axis=0)       # (F_TILE+8, hop)
    frames = jnp.concatenate(
        [slab[j:j + f_tile] for j in range(n_hops)], axis=1)           # (F_TILE, n_fft) f32

    # Fused real/imag STFT matmul on the MXU (K = n_fft), f32 accumulation.
    spec = jnp.dot(frames.astype(basis_ref.dtype), basis_ref[...],
                   preferred_element_type=jnp.float32)                 # (F_TILE, 2*nf)
    re = spec[:, :nf]
    im = spec[:, nf:]
    mag = jnp.sqrt(re * re + im * im + 1e-6)                           # pow2_sqrt

    # One transpose is unavoidable (time-contiguous input, frame-on-lanes
    # output); apply it to the magnitudes so the mel matmul runs with
    # N = F_TILE (full MXU width) and the output store is lane-dense.
    mag_t = mag.T.astype(fbt_ref.dtype)                                # (nf, F_TILE)
    mel_t = jnp.dot(fbt_ref[...], mag_t,
                    preferred_element_type=jnp.float32)                # (n_mels, F_TILE)
    out_ref[0] = jnp.log(jnp.maximum(mel_t, 1e-5)).astype(out_ref.dtype)


class LogMelSpectrogramPallas:
    def __init__(self, sample_rate=16000, n_fft=256, win_length=256,
                 hop_length=64, n_mels=128, f_min=0.0, f_max=None,
                 f_tile=1024, compute_dtype=jnp.bfloat16,
                 out_dtype=jnp.bfloat16):
        assert win_length == n_fft, "kernel assumes win_length == n_fft (module default)"
        assert n_fft % 2 == 0
        assert n_fft % hop_length == 0, "in-kernel framing assumes hop_length | n_fft"
        assert n_fft // hop_length - 1 <= _TAIL_CHUNKS, \
            "frame overlap (n_fft/hop - 1 chunks) exceeds the 8-chunk tail budget"
        self.sample_rate = sample_rate
        self.n_fft = n_fft
        self.win_length = win_length
        self.hop_length = hop_length
        self.n_mels = n_mels
        self.f_min = f_min
        self.f_max = f_max or float(sample_rate // 2)
        self.f_tile = f_tile
        self.compute_dtype = compute_dtype
        self.out_dtype = out_dtype

        n_freqs_full = n_fft // 2 + 1
        self.n_freqs = n_fft // 2          # Nyquist bin dropped (guard below)

        b_re, b_im = windowed_rdft_matrices(n_fft, win_length)          # float64
        fb_full = melscale_fbanks_slaney(n_freqs_full, self.f_min, self.f_max,
                                         n_mels, sample_rate)           # float64

        # The slaney fbank's Nyquist row is zero whenever f_max <= sr/2 (the
        # module's default clamp), so dropping the Nyquist bin is loss-free and
        # keeps every lane dimension a clean multiple of 128.
        nyq = float(np.max(np.abs(fb_full[-1])))
        if nyq > 1e-6 * max(float(np.max(fb_full)), 1.0):
            # TODO(synk): fold the Nyquist bin separately if f_max > sample_rate/2.
            raise ValueError("Nyquist mel-fbank row is non-zero; cannot drop it.")

        fused = np.concatenate([b_re[:, :self.n_freqs], b_im[:, :self.n_freqs]], axis=1)
        # MXU operands in compute_dtype (bf16 default, f32 accumulation in
        # kernel); compute_dtype=float32 keeps the whole pipeline in f32.
        self.basis = jnp.asarray(fused, dtype=compute_dtype)            # (n_fft, 2*nf)
        self.fb_t = jnp.asarray(fb_full[:self.n_freqs].T,
                                dtype=compute_dtype)                    # (n_mels, nf)

        # Full-precision copies for the pure-JAX reference (validation only).
        self._b_re32 = jnp.asarray(b_re, dtype=jnp.float32)
        self._b_im32 = jnp.asarray(b_im, dtype=jnp.float32)
        self._fb32 = jnp.asarray(fb_full, dtype=jnp.float32)

    # ------------------------------------------------------------------ call
    def __call__(self, x):
        # x: (B, T) float32 waveform (or (B, 1, T), matching the torch module)
        if x.ndim == 3:
            x = jnp.squeeze(x, axis=1)
        x = x.astype(jnp.float32)
        B, T = x.shape
        hop, n_fft = self.hop_length, self.n_fft

        # Reflect padding exactly as in LinearSpectrogram.forward.
        pad_l = (self.win_length - hop) // 2
        pad_r = (self.win_length - hop + 1) // 2
        y = jnp.pad(x, ((0, 0), (pad_l, pad_r)), mode="reflect")
        padded_len = T + pad_l + pad_r
        F = (padded_len - n_fft) // hop + 1

        # Frame-tile size: as large as possible (amortizes per-step overhead),
        # shrunk only so the grid keeps >= 2 steps (v7x has 2 TensorCores).
        f_tile = min(self.f_tile, _round_up(F, 128))
        while f_tile > 128 and B * _cdiv(F, f_tile) < 2:
            f_tile = max(128, _round_up(f_tile // 2, 128))
        F_pad = _round_up(F, f_tile)

        # Hop-chunked waveform, f32, no gather and no frame expansion in HBM.
        total = (F_pad + _TAIL_CHUNKS) * hop
        if total >= padded_len:
            y = jnp.pad(y, ((0, 0), (0, total - padded_len)))
        else:   # only trims trailing samples no valid frame touches
            y = y[:, :total]
        chunks = y.reshape(B, F_pad + _TAIL_CHUNKS, hop)

        nf, n_mels = self.n_freqs, self.n_mels
        grid = (B, F_pad // f_tile)
        tail_scale = f_tile // _TAIL_CHUNKS

        out_isz = jnp.dtype(self.out_dtype).itemsize
        cmp_isz = jnp.dtype(self.compute_dtype).itemsize
        flops = 2 * B * F_pad * (n_fft * (2 * nf) + nf * n_mels)
        transcendentals = B * F_pad * (nf + n_mels)                      # sqrt + log
        bytes_accessed = (int(chunks.size) * 4
                          + (int(self.basis.size) + int(self.fb_t.size)) * cmp_isz
                          + B * n_mels * F_pad * out_isz)

        out = pl.pallas_call(
            _logmel_kernel,
            out_shape=jax.ShapeDtypeStruct((B, n_mels, F_pad), self.out_dtype),
            grid=grid,
            in_specs=[
                pl.BlockSpec((1, f_tile, hop), lambda b, f: (b, f, 0)),
                pl.BlockSpec((1, _TAIL_CHUNKS, hop),
                             lambda b, f, s=tail_scale: (b, (f + 1) * s, 0)),
                pl.BlockSpec((n_fft, 2 * nf), lambda b, f: (0, 0)),
                pl.BlockSpec((n_mels, nf), lambda b, f: (0, 0)),
            ],
            out_specs=pl.BlockSpec((1, n_mels, f_tile), lambda b, f: (b, 0, f)),
            compiler_params=pltpu.CompilerParams(
                dimension_semantics=("parallel", "parallel")),
            cost_estimate=pl.CostEstimate(flops=flops,
                                          transcendentals=transcendentals,
                                          bytes_accessed=bytes_accessed),
        )(chunks, chunks, self.basis, self.fb_t)

        if F_pad != F:
            out = out[:, :, :F]
        return out                                   # (B, n_mels, frames)

    # ------------------------------------------------------------- reference
    def reference(self, x):
        # Pure-JAX float32 reference (mirrors the PyTorch module), for tests.
        if x.ndim == 3:
            x = jnp.squeeze(x, axis=1)
        x = x.astype(jnp.float32)
        pad_l = (self.win_length - self.hop_length) // 2
        pad_r = (self.win_length - self.hop_length + 1) // 2
        y = jnp.pad(x, ((0, 0), (pad_l, pad_r)), mode="reflect")
        F = (y.shape[1] - self.n_fft) // self.hop_length + 1
        idx = (np.arange(F)[:, None] * self.hop_length
               + np.arange(self.n_fft)[None, :])
        frames = y[:, idx]
        hi = jax.lax.Precision.HIGHEST
        re = jnp.einsum("bfn,nk->bfk", frames, self._b_re32, precision=hi)
        im = jnp.einsum("bfn,nk->bfk", frames, self._b_im32, precision=hi)
        mag = jnp.sqrt(re * re + im * im + 1e-6)
        mel = jnp.einsum("bfk,km->bfm", mag, self._fb32, precision=hi)
        return jnp.transpose(jnp.log(jnp.maximum(mel, 1e-5)), (0, 2, 1))


if __name__ == "__main__":
    # Small deterministic example: batch=2, 1024 samples @ 16 kHz,
    # n_fft = win = 256, hop = 64, n_mels = 128  ->  16 frames.
    key = jax.random.PRNGKey(0)
    B, T, sr = 2, 1024, 16000
    t = jnp.arange(T, dtype=jnp.float32) / sr
    tones = (0.30 * jnp.sin(2 * jnp.pi * 440.0 * t)
             + 0.15 * jnp.sin(2 * jnp.pi * 1850.0 * t)
             + 0.05 * jnp.sin(2 * jnp.pi * 5200.0 * t))
    amp = jnp.array([[1.0], [0.05]], dtype=jnp.float32)   # includes low-amplitude entry
    x = amp * tones[None, :] + 0.02 * jax.random.normal(key, (B, T), dtype=jnp.float32)

    # 1) Full-f32 compute path: tight structural check against the reference
    #    (catches padding / hop-alignment / fbank / transpose bugs).
    exact = LogMelSpectrogramPallas(sample_rate=sr, n_fft=256, win_length=256,
                                    hop_length=64, n_mels=128,
                                    compute_dtype=jnp.float32,
                                    out_dtype=jnp.float32)
    mel_exact = exact(x)
    jax.block_until_ready(mel_exact)
    assert mel_exact.shape == (B, 128, 16), mel_exact.shape
    ref = exact.reference(x)
    jax.block_until_ready(ref)
    err_exact = float(jnp.max(jnp.abs(mel_exact - ref)))
    assert np.isfinite(err_exact) and err_exact < 2e-2, \
        f"f32 kernel deviates from reference: max |d log-mel| = {err_exact}"

    # 2) Default fast path (bf16 MXU operands, bf16 output).
    fast = LogMelSpectrogramPallas(sample_rate=sr, n_fft=256, win_length=256,
                                   hop_length=64, n_mels=128)
    mel_fast = fast(x)
    jax.block_until_ready(mel_fast)
    assert mel_fast.shape == (B, 128, 16), mel_fast.shape
    assert mel_fast.dtype == jnp.bfloat16
    mel_fast32 = mel_fast.astype(jnp.float32)
    assert bool(jnp.all(jnp.isfinite(mel_fast32)))
    dlog = jnp.abs(mel_fast32 - ref)
    mean_err = float(jnp.mean(dlog))
    p99_err = float(jnp.quantile(dlog, 0.99))
    max_err = float(jnp.max(dlog))
    # bf16 operands: small errors everywhere; a Rayleigh-faded near-empty bin
    # can show a larger *relative* error, hence the looser tail bounds.
    assert mean_err < 2e-2, f"bf16 kernel mean |d log-mel| too large: {mean_err}"
    assert p99_err < 0.25, f"bf16 kernel p99 |d log-mel| too large: {p99_err}"
    assert max_err < 1.5, f"bf16 kernel max |d log-mel| too large: {max_err}"

    print("KERNEL_OK")
</pallas_src>

<mosaic_0001>
module attributes {stable_mosaic.version = 11 : i64} {
  func.func @_logmel_kernel(%arg0: i32, %arg1: i32, %arg2: memref<1x128x64xf32, #tpu.memory_space<vmem>>, %arg3: memref<1x8x64xf32, #tpu.memory_space<vmem>>, %arg4: memref<256x256xf32, #tpu.memory_space<vmem>>, %arg5: memref<128x128xf32, #tpu.memory_space<vmem>>, %arg6: memref<1x128x128xf32, #tpu.memory_space<vmem>>) attributes {dimension_semantics = [#tpu.dimension_semantics<parallel>, #tpu.dimension_semantics<parallel>], iteration_bounds = array<i64: 2, 1>, scalar_prefetch = 0 : i64, scratch_operands = 0 : i64, tpu.core_type = #tpu.core_type<tc>, window_params = [{transform_indices = @transform_0, window_bounds = array<i64: 1, 128, 64>}, {transform_indices = @transform_1, window_bounds = array<i64: 1, 8, 64>}, {pipeline_mode = #tpu.pipeline_mode<synchronous>, transform_indices = @transform_2, window_bounds = array<i64: 256, 256>}, {pipeline_mode = #tpu.pipeline_mode<synchronous>, transform_indices = @transform_3, window_bounds = array<i64: 128, 128>}, {transform_indices = @transform_4, window_bounds = array<i64: 1, 128, 128>}]} {
    %c0 = arith.constant 0 : index
    %c0_0 = arith.constant 0 : index
    %c0_1 = arith.constant 0 : index
    %0 = vector.load %arg2[%c0, %c0_0, %c0_1] : memref<1x128x64xf32, #tpu.memory_space<vmem>>, vector<1x128x64xf32>
    %1 = vector.shape_cast %0 : vector<1x128x64xf32> to vector<128x64xf32>
    %c0_2 = arith.constant 0 : index
    %c0_3 = arith.constant 0 : index
    %c0_4 = arith.constant 0 : index
    %2 = vector.load %arg3[%c0_2, %c0_3, %c0_4] : memref<1x8x64xf32, #tpu.memory_space<vmem>>, vector<1x8x64xf32>
    %3 = vector.shape_cast %2 : vector<1x8x64xf32> to vector<8x64xf32>
    %4 = tpu.concatenate %1, %3 in 0 : vector<128x64xf32>, vector<8x64xf32> -> vector<136x64xf32>
    %5 = vector.extract_strided_slice %4 {offsets = [0, 0], sizes = [128, 64], strides = [1, 1]} : vector<136x64xf32> to vector<128x64xf32>
    %6 = vector.extract_strided_slice %4 {offsets = [1, 0], sizes = [128, 64], strides = [1, 1]} : vector<136x64xf32> to vector<128x64xf32>
    %7 = vector.extract_strided_slice %4 {offsets = [2, 0], sizes = [128, 64], strides = [1, 1]} : vector<136x64xf32> to vector<128x64xf32>
    %8 = vector.extract_strided_slice %4 {offsets = [3, 0], sizes = [128, 64], strides = [1, 1]} : vector<136x64xf32> to vector<128x64xf32>
    %9 = tpu.concatenate %5, %6, %7, %8 in 1 : vector<128x64xf32>, vector<128x64xf32>, vector<128x64xf32>, vector<128x64xf32> -> vector<128x256xf32>
    %c0_5 = arith.constant 0 : index
    %c0_6 = arith.constant 0 : index
    %10 = vector.load %arg4[%c0_5, %c0_6] : memref<256x256xf32, #tpu.memory_space<vmem>>, vector<256x256xf32>
    %cst = arith.constant dense<0.000000e+00> : vector<128x256xf32>
    %11 = tpu.matmul %9, %10, %cst {dimension_numbers = #tpu.dot_dimension_numbers<[1], [0], [0], [1], [0, 0, 1, 1], [], []>} : vector<128x256xf32>, vector<256x256xf32>, vector<128x256xf32> -> vector<128x256xf32>
    %12 = vector.extract_strided_slice %11 {offsets = [0, 0], sizes = [128, 128], strides = [1, 1]} : vector<128x256xf32> to vector<128x128xf32>
    %13 = vector.extract_strided_slice %11 {offsets = [0, 128], sizes = [128, 128], strides = [1, 1]} : vector<128x256xf32> to vector<128x128xf32>
    %14 = arith.mulf %12, %12 : vector<128x128xf32>
    %15 = arith.mulf %13, %13 : vector<128x128xf32>
    %16 = arith.addf %14, %15 : vector<128x128xf32>
    %cst_7 = arith.constant 9.99999997E-7 : f32
    %17 = vector.broadcast %cst_7 : f32 to vector<128x128xf32>
    %18 = arith.addf %16, %17 : vector<128x128xf32>
    %19 = math.sqrt %18 : vector<128x128xf32>
    %20 = tpu.transpose %19, [1, 0] : vector<128x128xf32> -> vector<128x128xf32>
    %c0_8 = arith.constant 0 : index
    %c0_9 = arith.constant 0 : index
    %21 = vector.load %arg5[%c0_8, %c0_9] : memref<128x128xf32, #tpu.memory_space<vmem>>, vector<128x128xf32>
    %cst_10 = arith.constant dense<0.000000e+00> : vector<128x128xf32>
    %22 = tpu.matmul %21, %20, %cst_10 {dimension_numbers = #tpu.dot_dimension_numbers<[1], [0], [0], [1], [0, 0, 1, 1], [], []>} : vector<128x128xf32>, vector<128x128xf32>, vector<128x128xf32> -> vector<128x128xf32>
    %cst_11 = arith.constant 9.99999974E-6 : f32
    %23 = vector.broadcast %cst_11 : f32 to vector<128x128xf32>
    %24 = arith.maximumf %22, %23 : vector<128x128xf32>
    %25 = math.log %24 : vector<128x128xf32>
    %c0_12 = arith.constant 0 : index
    %c0_13 = arith.constant 0 : index
    %c0_14 = arith.constant 0 : index
    %26 = vector.load %arg6[%c0_12, %c0_13, %c0_14] : memref<1x128x128xf32, #tpu.memory_space<vmem>>, vector<1x128x128xf32>
    %27 = vector.shape_cast %26 : vector<1x128x128xf32> to vector<128x128xf32>
    %28 = vector.shape_cast %25 : vector<128x128xf32> to vector<1x128x128xf32>
    tpu.vector_store %arg6[%c0_12, %c0_13, %c0_14], %28 {strides = array<i32>} : memref<1x128x128xf32, #tpu.memory_space<vmem>>, vector<1x128x128xf32>,
    return
  }
  func.func @transform_0(%arg0: i32, %arg1: i32) -> (i32, i32, i32) {
    %c0_i32 = arith.constant 0 : i32
    %c0_i32_0 = arith.constant 0 : i32
    return %arg0, %arg1, %c0_i32 : i32, i32, i32
  }
  func.func @transform_1(%arg0: i32, %arg1: i32) -> (i32, i32, i32) {
    %c1_i32 = arith.constant 1 : i32
    %0 = arith.addi %arg1, %c1_i32 : i32
    %c16_i32 = arith.constant 16 : i32
    %1 = arith.muli %0, %c16_i32 : i32
    %c0_i32 = arith.constant 0 : i32
    %c0_i32_0 = arith.constant 0 : i32
    return %arg0, %1, %c0_i32 : i32, i32, i32
  }
  func.func @transform_2(%arg0: i32, %arg1: i32) -> (i32, i32) {
    %c0_i32 = arith.constant 0 : i32
    %c0_i32_0 = arith.constant 0 : i32
    %c0_i32_1 = arith.constant 0 : i32
    return %c0_i32, %c0_i32_0 : i32, i32
  }
  func.func @transform_3(%arg0: i32, %arg1: i32) -> (i32, i32) {
    %c0_i32 = arith.constant 0 : i32
    %c0_i32_0 = arith.constant 0 : i32
    %c0_i32_1 = arith.constant 0 : i32
    return %c0_i32, %c0_i32_0 : i32, i32
  }
  func.func @transform_4(%arg0: i32, %arg1: i32) -> (i32, i32, i32) {
    %c0_i32 = arith.constant 0 : i32
    %c0_i32_0 = arith.constant 0 : i32
    return %arg0, %c0_i32, %arg1 : i32, i32, i32
  }
}

</mosaic_0001>

<bundles_post_ra>
// kernel: tpu_custom_call.1
= control target key start
LH: loop header
LB: loop body
LE: loop exit
PB: predicated region body
PF: predicated region fallthrough
CT: control target
= control target key end

     0   :  { %9 = vsyncpa [#allocation3], 0  ;;  %s2515_s0 = inlined_call_operand.vmem [shape: f32[2,136,64], index: 0, kind: input, shape index: {}]   ;;  %s2516_s1 = inlined_call_operand.vmem [shape: f32[2,136,64], index: 1, kind: input, shape index: {}]   ;;  %s2517_s2 = inlined_call_operand.vmem [shape: f32[256,256], index: 2, kind: input, shape index: {}]   ;;  %s2518_s3 = inlined_call_operand.vmem [shape: f32[128,128], index: 3, kind: input, shape index: {}]   ;;  %s2519_s4 = inlined_call_operand.hbm [shape: f32[2,128,128], index: 4, kind: output, shape index: {}]  }
   0x1   :  { %11 = vsyncpa [#allocation3 + $0x1], 0  ;;  %s1823_s15 = smov 0   ;;  %s1825_s16 = smov 0  }
   0x2   :  { %s1827_s17 = smov 0   ;;  %s1829_s18 = smov 0  }
   0x3   :  { %s1831_s19 = smov 0   ;;  %s1833_s20 = smov 0  }
   0x4 LB: > { %s1309_s21 = sadd.s32 4294967295, %s1792_s20   ;;  %s1310_s22 = sadd.s32 4294967294, %s1792_s20   ;;  %s1792_s20 = sphi %s1833_s20, %s17_s20   ;;  %s1788_s19 = sphi %s1831_s19, %s2526_s19   ;;  %s1784_s18 = sphi %s1829_s18, %s2525_s18   ;;  %s1780_s17 = sphi %s1827_s17, %s2524_s17   ;;  %s1776_s16 = sphi %s1825_s16, %s2523_s16   ;;  %s1772_s15 = sphi %s1823_s15, %s2522_s15  }
   0x5   : > { %s29_s23 = sadd.s32 1, %s1788_s19  ;;  %s140_s24 = sadd.s32 1, %s1780_s17 }
   0x6   : > { %p31_p0 = scmp.ge.s32.totalorder %s29_s23, 2  ;;  %p150_p1 = scmp.ne.s32.totalorder %s1780_s17, %s1776_s16 }
   0x7   : > { %p151_p2 = scmp.eq.s32.totalorder %s1309_s21, 1  ;;  %p156_p3 = scmp.ne.s32.totalorder %s1776_s16, %s1772_s15 }
   0x8   : > { %s2528_s23 = smov (%p31_p0, %s29_s23), 0  ;;  %p157_p5 = scmp.eq.s32.totalorder %s1310_s22, 1 }
   0x9   : > { %p1863_p4 = por %p151_p2, %p150_p1  ;;  %s135_s26 = ssub.s32 %s1788_s19, %s2528_s23 }
   0xa   : > { %p1313_p6 = scmp.ge.s32.totalorder %s1792_s20, 1  ;;  %p138_p7 = scmp.eq.s32.totalorder %s135_s26, 0 }
   0xb   : > { %p1870_p8 = por %p157_p5, %p156_p3  ;;  %p217_p9 = scmp.lt.s32.totalorder %s1792_s20, 3 }
   0xc   : > { %s1876_s28 = scalar_select %p138_p7, %s1780_s17, %s140_s24  }
   0xd   : > { %p218_p10 = pnand %p1313_p6, %p217_p9 }
   0xe   : > { %p266_p11 = scmp.lt.s32.totalorder (!%p218_p10), %s1784_s18, 1  ;;  %v573_v0 = vld [vmem:[%s2517_s2 + $0x8] sm:$0xff] (!%p218_p10)  ;;  %v575_v1 = vld [vmem:[%s2517_s2 + $0x18] sm:$0xff] (!%p218_p10)  ;;  %v572_v3 = vld [vmem:[%s2517_s2] sm:$0xff] (!%p218_p10)  ;;  %vm325_vm0 = vcmask (!%p218_p10), 1046528   ;;  %vm457_vm1 = vcmask (!%p218_p10), 1044480  }
   0xf   : > { %221 = sbr.rel (%p218_p10) target bundleno = 727 (0x2d7), region = 36  ;;  %v1413_v2 = vpack.c.bf16 (!%p218_p10), %v575_v1, %v573_v0  ;;  %v574_v4 = vld [vmem:[%s2517_s2 + $0x10] sm:$0xff] (!%p218_p10)  ;;  %v577_v5 = vld [vmem:[%s2517_s2 + $0x28] sm:$0xff] (!%p218_p10)  ;;  %v579_v7 = vld [vmem:[%s2517_s2 + $0x38] sm:$0xff] (!%p218_p10)  ;;  %s1794_s29 = smov (!%p218_p10), 64   ;;  %vm407_vm2 = vcmask (!%p218_p10), 1045504  }
  0x10   : > { %v1415_v6 = vpack.c.bf16 (!%p218_p10), %v574_v4, %v572_v3  ;;  %v576_v8 = vld [vmem:[%s2517_s2 + $0x20] sm:$0xff] (!%p218_p10)  ;;  %v578_v9 = vld [vmem:[%s2517_s2 + $0x30] sm:$0xff] (!%p218_p10)  ;;  %v1417_v10 = vpack.c.bf16 (!%p218_p10), %v579_v7, %v577_v5  ;;  %v581_v11 = vld [vmem:[%s2517_s2 + $0x48] sm:$0xff] (!%p218_p10)  ;;  %vm539_vm3 = vcmask (!%p218_p10), 523264   ;;  %s1795_s12 = smov (!%p218_p10), [#allocation2]  }
  0x11   : > { %1414 = vmatprep.subr.bf16.mxu0 (!%p218_p10), %v1413_v2  ;;  %v583_v12 = vld [vmem:[%s2517_s2 + $0x58] sm:$0xff] (!%p218_p10)  ;;  %v580_v13 = vld [vmem:[%s2517_s2 + $0x40] sm:$0xff] (!%p218_p10)  ;;  %v1419_v14 = vpack.c.bf16 (!%p218_p10), %v578_v9, %v576_v8  ;;  %v582_v15 = vld [vmem:[%s2517_s2 + $0x50] sm:$0xff] (!%p218_p10)  ;;  %s1718_s14 = sshll.u32 (!%p218_p10), %s1795_s12, 4  ;;  %s1719_s14 = int_to_ptr.vmem [resolvable:$false] %s1718_s14 }
  0x12   : > { %1416 = vmatpush1.bf16.msra.mxu0 (!%p218_p10), %v1415_v6  ;;  %v585_v16 = vld [vmem:[%s2517_s2 + $0x68] sm:$0xff] (!%p218_p10)  ;;  %v587_v17 = vld [vmem:[%s2517_s2 + $0x78] sm:$0xff] (!%p218_p10)  ;;  %v1421_v18 = vpack.c.bf16 (!%p218_p10), %v583_v12, %v581_v11  ;;  %v1928_v19 = vld [vmem:[%s2517_s2 + $0x60] sm:$0xff] (!%p218_p10)  ;;  %v1423_v24 = vpack.c.bf16 (!%p218_p10), %v582_v15, %v580_v13  ;;  %s1720_s21 = scalar_lea.vmem (!%p218_p10), %s1719_s14, 4096 }
  0x13   : > { %1418 = vmatprep.subr.bf16.mxu0 (!%p218_p10), %v1417_v10  ;;  %v1933_v20 = vld [vmem:[%s2517_s2 + $0x70] sm:$0xff] (!%p218_p10)  ;;  %v1425_v25 = vpack.c.bf16 (!%p218_p10), %v587_v17, %v585_v16  ;;  %v589_v37 = vld [vmem:[%s2517_s2 + $0x88] sm:$0xff] (!%p218_p10)  ;;  %v591_v38 = vld [vmem:[%s2517_s2 + $0x98] sm:$0xff] (!%p218_p10) }
  0x14   : > { %v1427_v26 = vpack.c.bf16 (!%p218_p10), %v1933_v20, %v1928_v19  ;;  %v1429_v53 = vpack.c.bf16 (!%p218_p10), %v591_v38, %v589_v37  ;;  %v588_v54 = vld [vmem:[%s2517_s2 + $0x80] sm:$0xff] (!%p218_p10)  ;;  %v590_v55 = vld [vmem:[%s2517_s2 + $0x90] sm:$0xff] (!%p218_p10) }
  0x15   : > { %v1431_v5 = vpack.c.bf16 (!%p218_p10), %v590_v55, %v588_v54 }
  0x16   : > { %s1895_s13 = scalar_select %p266_p11, %s1784_s18, 1  ;;  %1420 = vmatpush1.bf16.msra.mxu0 %v1419_v14 }
  0x17   : > { %1422 = vmatprep.subr.bf16.mxu0 %v1421_v18 }
  0x18   : > { %s1509_s10 = smul.u32 136, %s1895_s13 }
  0x1a   : > { %s1940_s8 = scalar_lea.vmem %s2515_s0, %s1509_s10  ;;  %1424 = vmatpush1.bf16.msra.mxu0 %v1423_v24  ;;  %s2044_s30 = sadd.s32 128, %s1509_s10 }
  0x1b   : > { %v1943_v21 = vld [vmem:[%s1940_s8] sm:$0xff]  ;;  %v1946_v22 = vld [vmem:[%s1940_s8 + $0x8] sm:$0xff]  ;;  %v1949_v23 = vld [vmem:[%s1940_s8 + $0x10] sm:$0xff]  ;;  %1426 = vmatprep.subr.bf16.mxu0 %v1425_v25  ;;  %s288_s7 = scalar_lea.vmem %s2516_s1, %s2044_s30  ;;  %s258_s30 = sand.u32 1, %s1776_s16  }
  0x1c   : > { %v326_v27 = vrot.slane %v1943_v21, 1  ;;  %v327_v28 = vrot.slane %v1946_v22, 1  ;;  %v458_v29 = vrot.slane %v1943_v21, 3  ;;  %v459_v30 = vrot.slane %v1946_v22, 3  ;;  %v1958_v31 = vld [vmem:[%s1940_s8 + $0x18] sm:$0xff]  ;;  %v1961_v32 = vld [vmem:[%s1940_s8 + $0x20] sm:$0xff] }
  0x1d   : > { %v329_v33 = vrot.slane %v1949_v23, 1  ;;  %v461_v34 = vrot.slane %v1949_v23, 3  ;;  %v331_v35 = vrot.slane %v1958_v31, 1  ;;  %v463_v36 = vrot.slane %v1958_v31, 3  ;;  %v1978_v43 = vld [vmem:[%s1940_s8 + $0x28] sm:$0xff]  ;;  %v1984_v48 = vld [vmem:[%s1940_s8 + $0x30] sm:$0xff] }
  0x1e   : > { %v328_v39 = vsel %vm325_vm0, %v326_v27, %v327_v28  ;;  %v460_v40 = vsel %vm457_vm1, %v458_v29, %v459_v30  ;;  %v333_v41 = vrot.slane %v1961_v32, 1  ;;  %v465_v42 = vrot.slane %v1961_v32, 3  ;;  %v1987_v49 = vld [vmem:[%s1940_s8 + $0x38] sm:$0xff]  ;;  %v2002_v60 = vld [vmem:[%s1940_s8 + $0x40] sm:$0xff]  ;;  %v2012_v4 = vld [vmem:[%s1940_s8 + $0x48] sm:$0xff]  ;;  %1428 = vmatpush1.bf16.msra.mxu0 %v1427_v26  ;;  %s1314_s5 = sshll.u32 %s258_s30, 7 }
  0x1f   : > { %v1570_v44 = vpack.i.bf16 %v328_v39, %v460_v40  ;;  %v330_v45 = vsel %vm325_vm0, %v327_v28, %v329_v33  ;;  %v462_v46 = vsel %vm457_vm1, %v459_v30, %v461_v34  ;;  %v332_v47 = vsel %vm325_vm0, %v329_v33, %v331_v35  ;;  %v2020_v11 = vld [vmem:[%s1940_s8 + $0x50] sm:$0xff]  ;;  %1430 = vmatprep.subr.bf16.mxu0 %v1429_v53  ;;  %v2028_v17 = vld [vmem:[%s1940_s8 + $0x58] sm:$0xff]  ;;  %v2035_v25 = vld [vmem:[%s1940_s8 + $0x60] sm:$0xff]  ;;  %s2440_s13 = scalar_lea.vmem [#allocation2], %s1314_s5  ;;  %s1324_s10 = sshll.u32 %s1784_s18, 11 }
  0x20   : > { %v464_v50 = vsel %vm457_vm1, %v461_v34, %v463_v36  ;;  %v334_v51 = vsel %vm325_vm0, %v331_v35, %v333_v41  ;;  %v466_v52 = vsel %vm457_vm1, %v463_v36, %v465_v42  ;;  %v1575_v56 = vpack.i.bf16 %v330_v45, %v462_v46  ;;  %v2050_v36 = vld [vmem:[%s1940_s8 + $0x68] sm:$0xff]  ;;  %v2055_v39 = vld [vmem:[%s1940_s8 + $0x70] sm:$0xff]  ;;  %v599_v53 = vld [vmem:[%s2517_s2 + $0xd8] sm:$0xff]  ;;  %s1213_s6 = sshll.u32 %s2440_s13, 4  ;;  %s2461_s11 = scalar_lea.hbm %s2519_s4, %s1324_s10  ;;  %s2463_s6 = int_to_ptr.vmem [resolvable:$true] %s1213_s6 }
  0x21   : > { %1571 = vrot.lane.b32.xlu0 %v1570_v44, %s1794_s29  ;;  %v1580_v57 = vpack.i.bf16 %v332_v47, %v464_v50  ;;  %v335_v58 = vrot.slane %v1978_v43, 1  ;;  %v467_v59 = vrot.slane %v1978_v43, 3  ;;  %v337_v61 = vrot.slane %v1984_v48, 1  ;;  %v593_v40 = vld [vmem:[%s2517_s2 + $0xa8] sm:$0xff]  ;;  %v592_v44 = vld [vmem:[%s2517_s2 + $0xa0] sm:$0xff]  ;;  %v594_v45 = vld [vmem:[%s2517_s2 + $0xb0] sm:$0xff]  ;;  %p1721_p1 = scmp.lt.s32.totalorder %s2463_s6, %s1719_s14 }
  0x22   : > { %v469_v62 = vrot.slane %v1984_v48, 3  ;;  %v339_v63 = vrot.slane %v1987_v49, 1  ;;  %v471_v0 = vrot.slane %v1987_v49, 3  ;;  %v1585_v1 = vpack.i.bf16 %v334_v51, %v466_v52  ;;  %1432 = vmatpush1.bf16.msra.mxu0 %v1431_v5  ;;  %v597_v52 = vld [vmem:[%s2517_s2 + $0xc8] sm:$0xff]  ;;  %s2469_s18 = scalar_lea.sflag [#allocation3], %s258_s30 }
  0x23   : > { %1581 = vrot.lane.b32.xlu1 %v1580_v57, %s1794_s29  ;;  %v336_v2 = vsel %vm325_vm0, %v333_v41, %v335_v58  ;;  %v468_v3 = vsel %vm457_vm1, %v465_v42, %v467_v59  ;;  %v338_v6 = vsel %vm325_vm0, %v335_v58, %v337_v61  ;;  %v341_v8 = vrot.slane %v2002_v60, 1  ;;  %v595_v42 = vld [vmem:[%s2517_s2 + $0xb8] sm:$0xff]  ;;  %v601_v5 = vld [vmem:[%s2517_s2 + $0xe8] sm:$0xff] }
  0x24   : > { %v470_v7 = vsel %vm457_vm1, %v467_v59, %v469_v62  ;;  %v473_v9 = vrot.slane %v2002_v60, 3  ;;  %v1590_v10 = vpack.i.bf16 %v336_v2, %v468_v3  ;;  %v340_v12 = vsel %vm325_vm0, %v337_v61, %v339_v63  ;;  %v2088_v57 = vld [vmem:[%s1940_s8 + $0x78] sm:$0xff]  ;;  %v2092_v61 = vld [vmem:[%s288_s7] sm:$0xff]  ;;  %s1714_s7 = scalar_lea.vmem %s2463_s6, 2048 }
  0x25   : > { %1576 = vrot.lane.b32.xlu0 %v1575_v56, %s1794_s29  ;;  %v472_v13 = vsel %vm457_vm1, %v469_v62, %v471_v0  ;;  %v343_v14 = vrot.slane %v2012_v4, 1  ;;  %v475_v15 = vrot.slane %v2012_v4, 3  ;;  %v1595_v16 = vpack.i.bf16 %v338_v6, %v470_v7  ;;  %v603_v6 = vld [vmem:[%s2517_s2 + $0xf8] sm:$0xff]  ;;  %p1715_p12 = scmp.ne.s32.totalorder %s2463_s6, %s1714_s7  ;;  %p1722_p2 = scmp.lt.s32.totalorder %s1720_s21, %s1714_s7 }
  0x26   : > { %v342_v18 = vsel %vm325_vm0, %v339_v63, %v341_v8  ;;  %v474_v19 = vsel %vm457_vm1, %v471_v0, %v473_v9  ;;  %v345_v20 = vrot.slane %v2020_v11, 1  ;;  %v477_v24 = vrot.slane %v2020_v11, 3  ;;  %v596_v0 = vld [vmem:[%s2517_s2 + $0xc0] sm:$0xff] }
  0x27   : > { %1586 = vrot.lane.b32.xlu1 %v1585_v1, %s1794_s29  ;;  %v1600_v26 = vpack.i.bf16 %v340_v12, %v472_v13  ;;  %v344_v27 = vsel %vm325_vm0, %v341_v8, %v343_v14  ;;  %v476_v28 = vsel %vm457_vm1, %v473_v9, %v475_v15  ;;  %v347_v29 = vrot.slane %v2028_v17, 1  ;;  %v598_v1 = vld [vmem:[%s2517_s2 + $0xd0] sm:$0xff]  ;;  %p1716_p13 = pnand %p1715_p12, %p1863_p4  ;;  %p1723_p3 = por %p1722_p2, %p1721_p1 }
  0x28   : > { %v479_v30 = vrot.slane %v2028_v17, 3  ;;  %v1605_v33 = vpack.i.bf16 %v342_v18, %v474_v19  ;;  %v349_v34 = vrot.slane %v2035_v25, 1  ;;  %v481_v35 = vrot.slane %v2035_v25, 3 }
  0x29   : > { %1591 = vrot.lane.b32.xlu0 %v1590_v10, %s1794_s29  ;;  %v346_v37 = vsel %vm325_vm0, %v343_v14, %v345_v20  ;;  %v478_v38 = vsel %vm457_vm1, %v475_v15, %v477_v24  ;;  %v1610_v41 = vpack.i.bf16 %v344_v27, %v476_v28  ;;  %v348_v46 = vsel %vm325_vm0, %v345_v20, %v347_v29  ;;  %v600_v20 = vld [vmem:[%s2517_s2 + $0xe0] sm:$0xff]  ;;  %v605_v27 = vld [vmem:[%s2517_s2 + $0x108] sm:$0xff]  ;;  %v607_v28 = vld [vmem:[%s2517_s2 + $0x118] sm:$0xff]  ;;  %p1717_p0 = pneg %p1716_p13 }
  0x2a   : > { %v480_v47 = vsel %vm457_vm1, %v477_v24, %v479_v30  ;;  %v351_v50 = vrot.slane %v2050_v36, 1  ;;  %v483_v51 = vrot.slane %v2050_v36, 3  ;;  %v1615_v54 = vpack.i.bf16 %v346_v37, %v478_v38  ;;  %v602_v24 = vld [vmem:[%s2517_s2 + $0xf0] sm:$0xff] }
  0x2b   : > { %1596 = vrot.lane.b32.xlu1 %v1595_v16, %s1794_s29  ;;  %v350_v55 = vsel %vm325_vm0, %v347_v29, %v349_v34  ;;  %v482_v56 = vsel %vm457_vm1, %v479_v30, %v481_v35  ;;  %v353_v58 = vrot.slane %v2055_v39, 1  ;;  %v485_v59 = vrot.slane %v2055_v39, 3  ;;  %p1724_p5 = pnand %p1723_p3, %p1717_p0 }
  0x2c   : > { %v1433_v62 = vpack.c.bf16 %v595_v42, %v593_v40  ;;  %v1435_v63 = vpack.c.bf16 %v594_v45, %v592_v44  ;;  %v1620_v2 = vpack.i.bf16 %v348_v46, %v480_v47  ;;  %v1437_v3 = vpack.c.bf16 %v599_v53, %v597_v52  ;;  %v604_v40 = vld [vmem:[%s2517_s2 + $0x100] sm:$0xff]  ;;  %v609_v44 = vld [vmem:[%s2517_s2 + $0x128] sm:$0xff]  ;;  %v611_v45 = vld [vmem:[%s2517_s2 + $0x138] sm:$0xff] }
  0x2d   : > { %1601 = vrot.lane.b32.xlu0 %v1600_v26, %s1794_s29  ;;  %v352_v7 = vsel %vm325_vm0, %v349_v34, %v351_v50  ;;  %v484_v8 = vsel %vm457_vm1, %v481_v35, %v483_v51  ;;  %v355_v9 = vrot.slane %v2088_v57, 1  ;;  %v487_v10 = vrot.slane %v2088_v57, 3  ;;  %v610_v52 = vld [vmem:[%s2517_s2 + $0x130] sm:$0xff]  ;;  %v613_v53 = vld [vmem:[%s2517_s2 + $0x148] sm:$0xff] }
  0x2e   : > { %1434 = vmatprep.subr.bf16.mxu0 %v1433_v62  ;;  %v1625_v12 = vpack.i.bf16 %v350_v55, %v482_v56  ;;  %v357_v13 = vrot.slane %v2092_v61, 1  ;;  %v1439_v14 = vpack.c.bf16 %v598_v1, %v596_v0  ;;  %v354_v15 = vsel %vm325_vm0, %v351_v50, %v353_v58  ;;  %v617_v62 = vld [vmem:[%s2517_s2 + $0x168] sm:$0xff] }
  0x2f   : > { %1606 = vrot.lane.b32.xlu1 %v1605_v33, %s1794_s29  ;;  %1436 = vmatpush1.bf16.msra.mxu0 %v1435_v63  ;;  %v486_v16 = vsel %vm457_vm1, %v483_v51, %v485_v59  ;;  %v489_v18 = vrot.slane %v2092_v61, 3  ;;  %v1441_v19 = vpack.c.bf16 %v603_v6, %v601_v5  ;;  %v1630_v26 = vpack.i.bf16 %v352_v7, %v484_v8  ;;  %v608_v51 = vld [vmem:[%s2517_s2 + $0x120] sm:$0xff]  ;;  %v619_v63 = vld [vmem:[%s2517_s2 + $0x178] sm:$0xff]  ;;  %v621_v5 = vld [vmem:[%s2517_s2 + $0x188] sm:$0xff] }
  0x30   : > { %1438 = vmatprep.subr.bf16.mxu0 %v1437_v3  ;;  %v356_v29 = vsel %vm325_vm0, %v353_v58, %v355_v9  ;;  %v488_v30 = vsel %vm457_vm1, %v485_v59, %v487_v10  ;;  %v1635_v33 = vpack.i.bf16 %v354_v15, %v486_v16  ;;  %v1443_v34 = vpack.c.bf16 %v602_v24, %v600_v20  ;;  %v612_v58 = vld [vmem:[%s2517_s2 + $0x140] sm:$0xff]  ;;  %v614_v59 = vld [vmem:[%s2517_s2 + $0x150] sm:$0xff]  ;;  %v623_v6 = vld [vmem:[%s2517_s2 + $0x198] sm:$0xff] }
  0x31   : > { %1611 = vrot.lane.b32.xlu0 %v1610_v41, %s1794_s29  ;;  %v358_v35 = vsel %vm325_vm0, %v355_v9, %v357_v13  ;;  %v490_v37 = vsel %vm457_vm1, %v487_v10, %v489_v18  ;;  %v1445_v38 = vpack.c.bf16 %v607_v28, %v605_v27  ;;  %v606_v41 = vld [vmem:[%s2517_s2 + $0x110] sm:$0xff]  ;;  %v1640_v42 = vpack.i.bf16 %v356_v29, %v488_v30  ;;  %v620_v9 = vld [vmem:[%s2517_s2 + $0x180] sm:$0xff]  ;;  %v627_v13 = vld [vmem:[%s2517_s2 + $0x1b8] sm:$0xff] }
  0x32   : > { %v1645_v46 = vpack.i.bf16 %v358_v35, %v490_v37  ;;  %v1447_v47 = vpack.c.bf16 %v606_v41, %v604_v40  ;;  %v1449_v50 = vpack.c.bf16 %v611_v45, %v609_v44  ;;  %v1451_v55 = vpack.c.bf16 %v610_v52, %v608_v51  ;;  %v618_v3 = vld [vmem:[%s2517_s2 + $0x170] sm:$0xff]  ;;  %v624_v16 = vld [vmem:[%s2517_s2 + $0x1a0] sm:$0xff]  ;;  %v631_v20 = vld [vmem:[%s2517_s2 + $0x1d8] sm:$0xff] }
  0x33   : > { %1616 = vrot.lane.b32.xlu1 %v1615_v54, %s1794_s29  ;;  %1440 = vmatpush1.bf16.msra.mxu0 %v1439_v14  ;;  %v615_v54 = vld [vmem:[%s2517_s2 + $0x158] sm:$0xff]  ;;  %v1455_v0 = vpack.c.bf16 %v614_v59, %v612_v58  ;;  %v1457_v1 = vpack.c.bf16 %v619_v63, %v617_v62  ;;  %v1461_v8 = vpack.c.bf16 %v623_v6, %v621_v5  ;;  %v622_v10 = vld [vmem:[%s2517_s2 + $0x190] sm:$0xff]  ;;  %v628_v27 = vld [vmem:[%s2517_s2 + $0x1c0] sm:$0xff]  ;;  %v408_v40 = vrot.slane %v1943_v21, 2 }
  0x34   : > { %1442 = vmatprep.subr.bf16.mxu0 %v1441_v19  ;;  %v1453_v56 = vpack.c.bf16 %v615_v54, %v613_v53  ;;  %v1463_v14 = vpack.c.bf16 %v622_v10, %v620_v9  ;;  %v626_v18 = vld [vmem:[%s2517_s2 + $0x1b0] sm:$0xff]  ;;  %v629_v19 = vld [vmem:[%s2517_s2 + $0x1c8] sm:$0xff]  ;;  %v635_v30 = vld [vmem:[%s2517_s2 + $0x1f8] sm:$0xff]  ;;  %v409_v41 = vrot.slane %v1946_v22, 2  ;;  %v411_v45 = vrot.slane %v1949_v23, 2 }
  0x35   : > { %1621 = vrot.lane.b32.xlu0 %v1620_v2, %s1794_s29  ;;  %v616_v2 = vld [vmem:[%s2517_s2 + $0x160] sm:$0xff]  ;;  %v1467_v24 = vpack.c.bf16 %v626_v18, %v624_v16  ;;  %v630_v28 = vld [vmem:[%s2517_s2 + $0x1d0] sm:$0xff]  ;;  %v633_v29 = vld [vmem:[%s2517_s2 + $0x1e8] sm:$0xff]  ;;  %v415_v59 = vrot.slane %v1961_v32, 2 }
  0x36   : > { %v1459_v7 = vpack.c.bf16 %v618_v3, %v616_v2  ;;  %v632_v35 = vld [vmem:[%s2517_s2 + $0x1e0] sm:$0xff]  ;;  %v634_v37 = vld [vmem:[%s2517_s2 + $0x1f0] sm:$0xff]  ;;  %v410_v44 = vsel %vm407_vm2, %v408_v40, %v409_v41 }
  0x37   : > { %1626 = vrot.lane.b32.xlu1 %v1625_v12, %s1794_s29  ;;  %1444 = vmatpush1.bf16.msra.mxu0 %v1443_v34  ;;  %v625_v12 = vld [vmem:[%s2517_s2 + $0x1a8] sm:$0xff]  ;;  %v1473_v34 = vpack.c.bf16 %v635_v30, %v633_v29 }
  0x38   : > { %1446 = vmatprep.subr.bf16.mxu0 %v1445_v38  ;;  %v1465_v15 = vpack.c.bf16 %v627_v13, %v625_v12  ;;  %v1475_v38 = vpack.c.bf16 %v634_v37, %v632_v35 }
  0x39   : > { %1631 = vrot.lane.b32.xlu0 %v1630_v26, %s1794_s29  ;;  %v1469_v26 = vpack.c.bf16 %v631_v20, %v629_v19 }
  0x3b   : > { %1636 = vrot.lane.b32.xlu1 %v1635_v33, %s1794_s29  ;;  %1448 = vmatpush1.bf16.msra.mxu0 %v1447_v47  ;;  %v1471_v33 = vpack.c.bf16 %v630_v28, %v628_v27 }
  0x3c   : > { %1450 = vmatprep.subr.bf16.mxu0 %v1449_v50 }
  0x3d   : > { %1641 = vrot.lane.b32.xlu0 %v1640_v42, %s1794_s29 }
  0x3f   : > { %1646 = vrot.lane.b32.xlu1 %v1645_v46, %s1794_s29  ;;  %1452 = vmatpush1.bf16.msra.mxu0 %v1451_v55  ;;  %v413_v46 = vrot.slane %v1958_v31, 2 }
  0x40   : > { %1454 = vmatprep.subr.bf16.mxu0 %v1453_v56  ;;  %v412_v56 = vsel %vm407_vm2, %v409_v41, %v411_v45 }
  0x41   : > { %v414_v58 = vsel %vm407_vm2, %v411_v45, %v413_v46 }
  0x43   : > { %1456 = vmatpush1.bf16.msra.mxu0 %v1455_v0 }
  0x44   : > { %1458 = vmatprep.subr.bf16.mxu0 %v1457_v1 }
  0x47   : > { %1460 = vmatpush1.bf16.msra.mxu0 %v1459_v7  ;;  %v416_v7 = vsel %vm407_vm2, %v413_v46, %v415_v59 }
  0x48   : > { %1462 = vmatprep.subr.bf16.mxu0 %v1461_v8  ;;  %v417_v8 = vrot.slane %v1978_v43, 2 }
  0x4b   : > { %1464 = vmatpush1.bf16.msra.mxu0 %v1463_v14 }
  0x4c   : > { %1466 = vmatprep.subr.bf16.mxu0 %v1465_v15  ;;  %v419_v15 = vrot.slane %v1984_v48, 2 }
  0x4f   : > { %1468 = vmatpush1.bf16.msra.mxu0 %v1467_v24 }
  0x50   : > { %1470 = vmatprep.subr.bf16.mxu0 %v1469_v26  ;;  %v421_v26 = vrot.slane %v1987_v49, 2 }
  0x53   : > { %1472 = vmatpush1.bf16.msra.mxu0 %v1471_v33 }
  0x54   : > { %1474 = vmatprep.subr.bf16.mxu0 %v1473_v34  ;;  %v423_v34 = vrot.slane %v2002_v60, 2 }
  0x57   : > { %1476 = vmatpush1.bf16.msra.mxu0 %v1475_v38 }
  0x93   : > { %v1572_v42 = vpop.permute.xlu0 %1571 }
  0x94   : > { %v1574_v47 = vunpack.i.h.bf16 %v1572_v42  ;;  %v1573_v50 = vunpack.i.l.bf16 %v1572_v42  ;;  %v425_v42 = vrot.slane %v2012_v4, 2 }
  0x95   : > { %v1582_v51 = vpop.permute.xlu1 %1581 }
  0x96   : > { %v556_v52 = vsel %vm539_vm3, %v410_v44, %v1573_v50  ;;  %v540_v53 = vsel %vm539_vm3, %v1943_v21, %v1574_v47  ;;  %v1583_v54 = vunpack.i.l.bf16 %v1582_v51  ;;  %v1584_v0 = vunpack.i.h.bf16 %v1582_v51 }
  0x97   : > { %v1577_v55 = vpop.permute.xlu0 %1576  ;;  %700 = vmatprep.mubr.f32.mxu0 %v556_v52  ;;  %v427_v51 = vrot.slane %v2020_v11, 2 }
  0x98   : > { %v1579_v62 = vunpack.i.h.bf16 %v1577_v55  ;;  %v1578_v63 = vunpack.i.l.bf16 %v1577_v55  ;;  %701 = vmatmul.mubr.f32.vlgmr.msra.gmra.mrb[0].mxu0 %v540_v53  ;;  %v558_v5 = vsel %vm539_vm3, %v414_v58, %v1583_v54  ;;  %v542_v10 = vsel %vm539_vm3, %v1949_v23, %v1584_v0 }
  0x99   : > { %v1587_v1 = vpop.permute.xlu1 %1586  ;;  %v420_v23 = vsel %vm407_vm2, %v417_v8, %v419_v15  ;;  %v429_v58 = vrot.slane %v2028_v17, 2 }
  0x9a   : > { %v557_v2 = vsel %vm539_vm3, %v412_v56, %v1578_v63  ;;  %v541_v3 = vsel %vm539_vm3, %v1946_v22, %v1579_v62  ;;  %v1588_v21 = vunpack.i.l.bf16 %v1587_v1  ;;  %v1589_v9 = vunpack.i.h.bf16 %v1587_v1 }
  0x9b   : > { %706 = vmatprep.mubr.f32.mxu0 %v557_v2  ;;  %v1592_v6 = vpop.permute.xlu0 %1591  ;;  %v418_v22 = vsel %vm407_vm2, %v415_v59, %v417_v8  ;;  %v431_v2 = vrot.slane %v2035_v25, 2  ;;  %v433_v8 = vrot.slane %v2050_v36, 2 }
  0x9c   : > { %707 = vmatmul.mubr.f32.gmra.mrb[2].mxu0 %v541_v3  ;;  %v1593_v12 = vunpack.i.l.bf16 %v1592_v6  ;;  %v559_v13 = vsel %vm539_vm3, %v416_v7, %v1588_v21  ;;  %v1594_v16 = vunpack.i.h.bf16 %v1592_v6  ;;  %v543_v18 = vsel %vm539_vm3, %v1958_v31, %v1589_v9 }
  0x9d   : > { %712 = vmatprep.mubr.f32.mxu0 %v558_v5  ;;  %v1597_v14 = vpop.permute.xlu1 %1596  ;;  %v422_v31 = vsel %vm407_vm2, %v419_v15, %v421_v26 }
  0x9e   : > { %v1598_v19 = vunpack.i.l.bf16 %v1597_v14  ;;  %v560_v20 = vsel %vm539_vm3, %v418_v22, %v1593_v12  ;;  %v1599_v27 = vunpack.i.h.bf16 %v1597_v14  ;;  %v544_v28 = vsel %vm539_vm3, %v1961_v32, %v1594_v16 }
  0x9f   : > { %v1602_v24 = vpop.permute.xlu0 %1601  ;;  %v424_v32 = vsel %vm407_vm2, %v421_v26, %v423_v34  ;;  %v435_v22 = vrot.slane %v2055_v39, 2 }
  0xa0   : > { %713 = vmatmul.mubr.f32.gmra.mrb[4].mxu0 %v542_v10  ;;  %v1603_v29 = vunpack.i.l.bf16 %v1602_v24  ;;  %v561_v30 = vsel %vm539_vm3, %v420_v23, %v1598_v19  ;;  %v1604_v35 = vunpack.i.h.bf16 %v1602_v24  ;;  %v545_v37 = vsel %vm539_vm3, %v1978_v43, %v1599_v27 }
  0xa1   : > { %718 = vmatprep.mubr.f32.mxu0 %v559_v13  ;;  %v1607_v33 = vpop.permute.xlu1 %1606  ;;  %v426_v43 = vsel %vm407_vm2, %v423_v34, %v425_v42  ;;  %v437_v24 = vrot.slane %v2088_v57, 2 }
  0xa2   : > { %v1608_v38 = vunpack.i.l.bf16 %v1607_v33  ;;  %v562_v40 = vsel %vm539_vm3, %v422_v31, %v1603_v29  ;;  %v1609_v44 = vunpack.i.h.bf16 %v1607_v33  ;;  %v546_v45 = vsel %vm539_vm3, %v1984_v48, %v1604_v35 }
  0xa3   : > { %v1612_v41 = vpop.permute.xlu0 %1611  ;;  %v428_v48 = vsel %vm407_vm2, %v425_v42, %v427_v51 }
  0xa4   : > { %719 = vmatmul.mubr.f32.gmra.mrb[6].mxu0 %v543_v18  ;;  %v1613_v46 = vunpack.i.l.bf16 %v1612_v41  ;;  %v563_v47 = vsel %vm539_vm3, %v424_v32, %v1608_v38  ;;  %v1614_v52 = vunpack.i.h.bf16 %v1612_v41  ;;  %v547_v53 = vsel %vm539_vm3, %v1987_v49, %v1609_v44 }
  0xa5   : > { %724 = vmatprep.mubr.f32.mxu0 %v560_v20  ;;  %v1617_v50 = vpop.permute.xlu1 %1616  ;;  %v430_v49 = vsel %vm407_vm2, %v427_v51, %v429_v58 }
  0xa6   : > { %v1618_v54 = vunpack.i.l.bf16 %v1617_v50  ;;  %v564_v55 = vsel %vm539_vm3, %v426_v43, %v1613_v46  ;;  %v1619_v59 = vunpack.i.h.bf16 %v1617_v50  ;;  %v548_v62 = vsel %vm539_vm3, %v2002_v60, %v1614_v52 }
  0xa7   : > { %v1622_v56 = vpop.permute.xlu0 %1621  ;;  %v432_v60 = vsel %vm407_vm2, %v429_v58, %v431_v2 }
  0xa8   : > { %725 = vmatmul.mubr.f32.gmra.mrb[8].mxu0 %v544_v28  ;;  %v1623_v63 = vunpack.i.l.bf16 %v1622_v56  ;;  %v565_v0 = vsel %vm539_vm3, %v428_v48, %v1618_v54  ;;  %v1624_v3 = vunpack.i.h.bf16 %v1622_v56  ;;  %v549_v21 = vsel %vm539_vm3, %v2012_v4, %v1619_v59 }
  0xa9   : > { %730 = vmatprep.mubr.f32.mxu0 %v561_v30  ;;  %v1627_v1 = vpop.permute.xlu1 %1626  ;;  %v434_v4 = vsel %vm407_vm2, %v431_v2, %v433_v8  ;;  %v439_v30 = vrot.slane %v2092_v61, 2 }
  0xaa   : > { %v1628_v5 = vunpack.i.l.bf16 %v1627_v1  ;;  %v566_v6 = vsel %vm539_vm3, %v430_v49, %v1623_v63  ;;  %v1629_v9 = vunpack.i.h.bf16 %v1627_v1  ;;  %v550_v10 = vsel %vm539_vm3, %v2020_v11, %v1624_v3 }
  0xab   : > { %v1632_v7 = vpop.permute.xlu0 %1631  ;;  %v436_v11 = vsel %vm407_vm2, %v433_v8, %v435_v22 }
  0xac   : > { %731 = vmatmul.mubr.f32.gmra.mrb[10].mxu0 %v545_v37  ;;  %v1633_v12 = vunpack.i.l.bf16 %v1632_v7  ;;  %v567_v13 = vsel %vm539_vm3, %v432_v60, %v1628_v5  ;;  %v1634_v15 = vunpack.i.h.bf16 %v1632_v7  ;;  %v551_v16 = vsel %vm539_vm3, %v2028_v17, %v1629_v9 }
  0xad   : > { %736 = vmatprep.mubr.f32.mxu0 %v562_v40  ;;  %v1637_v14 = vpop.permute.xlu1 %1636  ;;  %v438_v17 = vsel %vm407_vm2, %v435_v22, %v437_v24  ;;  %v440_v37 = vsel %vm407_vm2, %v437_v24, %v439_v30 }
  0xae   : > { %v1638_v18 = vunpack.i.l.bf16 %v1637_v14  ;;  %v568_v19 = vsel %vm539_vm3, %v434_v4, %v1633_v12  ;;  %v1639_v23 = vunpack.i.h.bf16 %v1637_v14  ;;  %v552_v26 = vsel %vm539_vm3, %v2035_v25, %v1634_v15 }
  0xaf   : > { %v1642_v20 = vpop.permute.xlu0 %1641 }
  0xb0   : > { %737 = vmatmul.mubr.f32.gmra.mrb[12].mxu0 %v546_v45  ;;  %v1643_v27 = vunpack.i.l.bf16 %v1642_v20  ;;  %v569_v28 = vsel %vm539_vm3, %v436_v11, %v1638_v18  ;;  %v1644_v33 = vunpack.i.h.bf16 %v1642_v20  ;;  %v553_v31 = vsel %vm539_vm3, %v2050_v36, %v1639_v23  ;;  %v973_v36 = vld [vmem:[%s2518_s3] sm:$0xff] }
  0xb1   : > { %742 = vmatprep.mubr.f32.mxu0 %v563_v47  ;;  %v1647_v29 = vpop.permute.xlu1 %1646  ;;  %1389 = vmatprep.mubr.f32.mxu1 %v973_v36 }
  0xb2   : > { %v1648_v34 = vunpack.i.l.bf16 %v1647_v29  ;;  %v570_v35 = vsel %vm539_vm3, %v438_v17, %v1643_v27  ;;  %v1649_v25 = vunpack.i.h.bf16 %v1647_v29  ;;  %v554_v38 = vsel %vm539_vm3, %v2055_v39, %v1644_v33 }
  0xb4   : > { %743 = vmatmul.mubr.f32.gmra.mrb[14].mxu0 %v547_v53  ;;  %v571_v40 = vsel %vm539_vm3, %v440_v37, %v1648_v34  ;;  %v555_v61 = vsel %vm539_vm3, %v2088_v57, %v1649_v25 }
  0xb5   : > { %748 = vmatprep.mubr.f32.mxu0 %v564_v55 }
  0xb8   : > { %749 = vmatmul.mubr.f32.gmra.mrb[16].mxu0 %v548_v62 }
  0xb9   : > { %754 = vmatprep.mubr.f32.mxu0 %v565_v0 }
  0xbc   : > { %755 = vmatmul.mubr.f32.gmra.mrb[18].mxu0 %v549_v21 }
  0xbd   : > { %760 = vmatprep.mubr.f32.mxu0 %v566_v6 }
  0xc0   : > { %761 = vmatmul.mubr.f32.gmra.mrb[20].mxu0 %v550_v10 }
  0xc1   : > { %766 = vmatprep.mubr.f32.mxu0 %v567_v13 }
  0xc4   : > { %767 = vmatmul.mubr.f32.gmra.mrb[22].mxu0 %v551_v16 }
  0xc5   : > { %772 = vmatprep.mubr.f32.mxu0 %v568_v19 }
  0xc8   : > { %773 = vmatmul.mubr.f32.gmra.mrb[24].mxu0 %v552_v26 }
  0xc9   : > { %778 = vmatprep.mubr.f32.mxu0 %v569_v28 }
  0xcc   : > { %779 = vmatmul.mubr.f32.gmra.mrb[26].mxu0 %v553_v31 }
  0xcd   : > { %784 = vmatprep.mubr.f32.mxu0 %v570_v35 }
  0xd0   : > { %785 = vmatmul.mubr.f32.gmra.mrb[28].mxu0 %v554_v38 }
  0xd1   : > { %790 = vmatprep.mubr.f32.mxu0 %v571_v40 }
  0xd4   : > { %791 = vmatmul.mubr.f32.gmra.mrb[30].mxu0 %v555_v61 }
 0x16b   : > { %v702_v41 = vpop.f32.mrb[0].mxu0 }
 0x16c   : > { %v797_v32 = vmul.f32 %v702_v41, %v702_v41  ;;  %v704_v42 = vpop.f32.mrb[1].mxu0 }
 0x16d   : > { %v813_v44 = vmul.f32 %v704_v42, %v704_v42 }
 0x16f   : > { %v829_v45 = vadd.f32 %v813_v44, %v797_v32  ;;  %v708_v46 = vpop.f32.mrb[2].mxu0 }
 0x170   : > { %v798_v39 = vmul.f32 %v708_v46, %v708_v46  ;;  %v710_v47 = vpop.f32.mrb[3].mxu0 }
 0x171   : > { %v845_v50 = vadd.f32 1e-06, %v829_v45  ;;  %v814_v43 = vmul.f32 %v710_v47, %v710_v47 }
 0x173   : > { %v830_v51 = vadd.f32 %v814_v43, %v798_v39  ;;  %v714_v52 = vpop.f32.mrb[4].mxu0  ;;  %1650 = vrsqrt.f32 %v845_v50  ;;  %vm863_vm4 = vcmp.eq.f32.partialorder %v845_v50, inf  ;;  %v866_v4 = vand.u32 2147483648, %v845_v50 }
 0x174   : > { %v799_v57 = vmul.f32 %v714_v52, %v714_v52  ;;  %v716_v53 = vpop.f32.mrb[5].mxu0  ;;  %vm865_vm6 = vcmp.eq.f32.partialorder %v845_v50, 0.0 }
 0x175   : > { %v846_v54 = vadd.f32 1e-06, %v830_v51  ;;  %v815_v55 = vmul.f32 %v716_v53, %v716_v53 }
 0x177   : > { %v831_v56 = vadd.f32 %v815_v55, %v799_v57  ;;  %v720_v48 = vpop.f32.mrb[6].mxu0  ;;  %1652 = vrsqrt.f32 %v846_v54  ;;  %vm870_vm5 = vcmp.eq.f32.partialorder %v846_v54, inf  ;;  %v873_v18 = vand.u32 2147483648, %v846_v54 }
 0x178   : > { %v800_v58 = vmul.f32 %v720_v48, %v720_v48  ;;  %v722_v59 = vpop.f32.mrb[7].mxu0  ;;  %vm872_vm7 = vcmp.eq.f32.partialorder %v846_v54, 0.0 }
 0x179   : > { %v2312_v62 = vadd.f32 1e-06, %v831_v56  ;;  %v816_v63 = vmul.f32 %v722_v59, %v722_v59 }
 0x17b   : > { %1654 = vrsqrt.f32 %v2312_v62  ;;  %v832_v0 = vadd.f32 %v816_v63, %v800_v58  ;;  %v726_v1 = vpop.f32.mrb[8].mxu0  ;;  %vm877_vm8 = vcmp.eq.f32.partialorder %v2312_v62, inf  ;;  %v880_v40 = vand.u32 2147483648, %v2312_v62 }
 0x17c   : > { %v801_v49 = vmul.f32 %v726_v1, %v726_v1  ;;  %v728_v2 = vpop.f32.mrb[9].mxu0  ;;  %vm879_vm10 = vcmp.eq.f32.partialorder %v2312_v62, 0.0 }
 0x17d   : > { %v1651_v3 = vpop.eup %1650  ;;  %v848_v21 = vadd.f32 1e-06, %v832_v0  ;;  %v817_v5 = vmul.f32 %v728_v2, %v728_v2 }
 0x17e   : > { %v862_v6 = vmul.f32 %v1651_v3, %v845_v50 }
 0x17f   : > { %1656 = vrsqrt.f32 %v848_v21  ;;  %v833_v7 = vadd.f32 %v817_v5, %v801_v49  ;;  %v732_v60 = vpop.f32.mrb[10].mxu0  ;;  %vm884_vm9 = vcmp.eq.f32.partialorder %v848_v21, inf  ;;  %v887_v32 = vand.u32 2147483648, %v848_v21 }
 0x180   : > { %v802_v8 = vmul.f32 %v732_v60, %v732_v60  ;;  %v734_v9 = vpop.f32.mrb[11].mxu0  ;;  %v864_v14 = vsel %vm863_vm4, %v845_v50, %v862_v6  ;;  %vm886_vm11 = vcmp.eq.f32.partialorder %v848_v21, 0.0 }
 0x181   : > { %v1653_v10 = vpop.eup %1652  ;;  %v2315_v12 = vadd.f32 1e-06, %v833_v7  ;;  %v818_v13 = vmul.f32 %v734_v9, %v734_v9  ;;  %v867_v27 = vsel %vm865_vm6, %v866_v4, %v864_v14 }
 0x182   : > { %v869_v22 = vmul.f32 %v1653_v10, %v846_v54 }
 0x183   : > { %1658 = vrsqrt.f32 %v2315_v12  ;;  %v834_v15 = vadd.f32 %v818_v13, %v802_v8  ;;  %v738_v16 = vpop.f32.mrb[12].mxu0  ;;  %vm891_vm12 = vcmp.eq.f32.partialorder %v2315_v12, inf  ;;  %vm893_vm14 = vcmp.eq.f32.partialorder %v2315_v12, 0.0 }
 0x184   : > { %v803_v19 = vmul.f32 %v738_v16, %v738_v16  ;;  %v740_v20 = vpop.f32.mrb[13].mxu0  ;;  %v871_v11 = vsel %vm870_vm5, %v846_v54, %v869_v22 }
 0x185   : > { %v1655_v24 = vpop.eup %1654  ;;  %v2318_v23 = vadd.f32 1e-06, %v834_v15  ;;  %v819_v26 = vmul.f32 %v740_v20, %v740_v20  ;;  %v874_v28 = vsel %vm872_vm7, %v873_v18, %v871_v11 }
 0x186   : > { %v1477_v29 = vpack.c.bf16 %v874_v28, %v867_v27  ;;  %v876_v17 = vmul.f32 %v1655_v24, %v2312_v62 }
 0x187   : > { %1660 = vrsqrt.f32 %v2318_v23  ;;  %v835_v30 = vadd.f32 %v819_v26, %v803_v19  ;;  %v744_v33 = vpop.f32.mrb[14].mxu0  ;;  %vm898_vm13 = vcmp.eq.f32.partialorder %v2318_v23, inf  ;;  %v901_v49 = vand.u32 2147483648, %v2318_v23 }
 0x188   : > { %v804_v31 = vmul.f32 %v744_v33, %v744_v33  ;;  %v746_v34 = vpop.f32.mrb[15].mxu0  ;;  %1478 = vmatprep.subr.bf16.mxu1 %v1477_v29  ;;  %v878_v38 = vsel %vm877_vm8, %v2312_v62, %v876_v17  ;;  %v894_v62 = vand.u32 2147483648, %v2315_v12  ;;  %vm900_vm15 = vcmp.eq.f32.partialorder %v2318_v23, 0.0 }
 0x189   : > { %v1657_v35 = vpop.eup %1656  ;;  %v2322_v37 = vadd.f32 1e-06, %v835_v30  ;;  %v820_v25 = vmul.f32 %v746_v34, %v746_v34  ;;  %1480 = vmatpush3.bf16.xpose.msra.mxu1 %v1477_v29  ;;  %v881_v50 = vsel %vm879_vm10, %v880_v40, %v878_v38 }
 0x18a   : > { %v883_v61 = vmul.f32 %v1657_v35, %v848_v21 }
 0x18b   : > { %1662 = vrsqrt.f32 %v2322_v37  ;;  %v836_v36 = vadd.f32 %v820_v25, %v804_v31  ;;  %v750_v41 = vpop.f32.mrb[16].mxu0  ;;  %vm905_vm0 = vcmp.eq.f32.partialorder %v2322_v37, inf  ;;  %v908_v19 = vand.u32 2147483648, %v2322_v37 }
 0x18c   : > { %v805_v42 = vmul.f32 %v750_v41, %v750_v41  ;;  %v752_v44 = vpop.f32.mrb[17].mxu0  ;;  %v885_v45 = vsel %vm884_vm9, %v848_v21, %v883_v61  ;;  %vm907_vm2 = vcmp.eq.f32.partialorder %v2322_v37, 0.0 }
 0x18d   : > { %v1659_v46 = vpop.eup %1658  ;;  %v2329_v39 = vadd.f32 1e-06, %v836_v36  ;;  %v821_v47 = vmul.f32 %v752_v44, %v752_v44  ;;  %v888_v43 = vsel %vm886_vm11, %v887_v32, %v885_v45 }
 0x18e   : > { %v1481_v51 = vpack.c.bf16 %v888_v43, %v881_v50  ;;  %v890_v52 = vmul.f32 %v1659_v46, %v2315_v12 }
 0x18f   : > { %1664 = vrsqrt.f32 %v2329_v39  ;;  %v837_v57 = vadd.f32 %v821_v47, %v805_v42  ;;  %v756_v53 = vpop.f32.mrb[18].mxu0  ;;  %vm912_vm1 = vcmp.eq.f32.partialorder %v2329_v39, inf  ;;  %vm914_vm3 = vcmp.eq.f32.partialorder %v2329_v39, 0.0 }
 0x190   : > { %v806_v54 = vmul.f32 %v756_v53, %v756_v53  ;;  %v758_v55 = vpop.f32.mrb[19].mxu0  ;;  %1482 = vmatprep.subr.bf16.mxu1 %v1481_v51  ;;  %v892_v59 = vsel %vm891_vm12, %v2315_v12, %v890_v52 }
 0x191   : > { %v1661_v56 = vpop.eup %1660  ;;  %v2333_v48 = vadd.f32 1e-06, %v837_v57  ;;  %v822_v58 = vmul.f32 %v758_v55, %v758_v55  ;;  %1484 = vmatpush3.bf16.xpose.msra.mxu1 %v1481_v51  ;;  %v895_v60 = vsel %vm893_vm14, %v894_v62, %v892_v59 }
 0x192   : > { %v897_v63 = vmul.f32 %v1661_v56, %v2318_v23 }
 0x193   : > { %1666 = vrsqrt.f32 %v2333_v48  ;;  %v838_v0 = vadd.f32 %v822_v58, %v806_v54  ;;  %v762_v1 = vpop.f32.mrb[20].mxu0  ;;  %vm919_vm4 = vcmp.eq.f32.partialorder %v2333_v48, inf  ;;  %v922_v42 = vand.u32 2147483648, %v2333_v48 }
 0x194   : > { %v807_v2 = vmul.f32 %v762_v1, %v762_v1  ;;  %v764_v3 = vpop.f32.mrb[21].mxu0  ;;  %v899_v21 = vsel %vm898_vm13, %v2318_v23, %v897_v63  ;;  %v915_v23 = vand.u32 2147483648, %v2329_v39  ;;  %vm921_vm6 = vcmp.eq.f32.partialorder %v2333_v48, 0.0 }
 0x195   : > { %v1663_v5 = vpop.eup %1662  ;;  %v2345_v6 = vadd.f32 1e-06, %v838_v0  ;;  %v823_v7 = vmul.f32 %v764_v3, %v764_v3  ;;  %v902_v8 = vsel %vm900_vm15, %v901_v49, %v899_v21 }
 0x196   : > { %v1485_v9 = vpack.c.bf16 %v902_v8, %v895_v60  ;;  %v904_v10 = vmul.f32 %v1663_v5, %v2322_v37 }
 0x197   : > { %1668 = vrsqrt.f32 %v2345_v6  ;;  %v839_v13 = vadd.f32 %v823_v7, %v807_v2  ;;  %v768_v14 = vpop.f32.mrb[22].mxu0  ;;  %vm926_vm5 = vcmp.eq.f32.partialorder %v2345_v6, inf  ;;  %vm928_vm7 = vcmp.eq.f32.partialorder %v2345_v6, 0.0 }
 0x198   : > { %v808_v4 = vmul.f32 %v768_v14, %v768_v14  ;;  %v770_v22 = vpop.f32.mrb[23].mxu0  ;;  %1486 = vmatprep.subr.bf16.mxu1 %v1485_v9  ;;  %v906_v18 = vsel %vm905_vm0, %v2322_v37, %v904_v10 }
 0x199   : > { %v1665_v12 = vpop.eup %1664  ;;  %v2349_v15 = vadd.f32 1e-06, %v839_v13  ;;  %v824_v16 = vmul.f32 %v770_v22, %v770_v22  ;;  %1488 = vmatpush3.bf16.xpose.msra.mxu1 %v1485_v9  ;;  %v909_v33 = vsel %vm907_vm2, %v908_v19, %v906_v18 }
 0x19a   : > { %v911_v20 = vmul.f32 %v1665_v12, %v2329_v39 }
 0x19b   : > { %1670 = vrsqrt.f32 %v2349_v15  ;;  %v840_v11 = vadd.f32 %v824_v16, %v808_v4  ;;  %v774_v24 = vpop.f32.mrb[24].mxu0  ;;  %vm933_vm8 = vcmp.eq.f32.partialorder %v2349_v15, inf  ;;  %v936_v2 = vand.u32 2147483648, %v2349_v15 }
 0x19c   : > { %v809_v26 = vmul.f32 %v774_v24, %v774_v24  ;;  %v776_v27 = vpop.f32.mrb[25].mxu0  ;;  %v913_v28 = vsel %vm912_vm1, %v2329_v39, %v911_v20  ;;  %v929_v39 = vand.u32 2147483648, %v2345_v6  ;;  %vm935_vm10 = vcmp.eq.f32.partialorder %v2349_v15, 0.0 }
 0x19d   : > { %v1667_v29 = vpop.eup %1666  ;;  %v2361_v17 = vadd.f32 1e-06, %v840_v11  ;;  %v825_v30 = vmul.f32 %v776_v27, %v776_v27  ;;  %v916_v31 = vsel %vm914_vm3, %v915_v23, %v913_v28 }
 0x19e   : > { %v1489_v34 = vpack.c.bf16 %v916_v31, %v909_v33  ;;  %v918_v35 = vmul.f32 %v1667_v29, %v2333_v48 }
 0x19f   : > { %1672 = vrsqrt.f32 %v2361_v17  ;;  %v841_v25 = vadd.f32 %v825_v30, %v809_v26  ;;  %v780_v38 = vpop.f32.mrb[26].mxu0  ;;  %vm940_vm9 = vcmp.eq.f32.partialorder %v2361_v17, inf  ;;  %v943_v5 = vand.u32 2147483648, %v2361_v17 }
 0x1a0   : > { %v810_v40 = vmul.f32 %v780_v38, %v780_v38  ;;  %v782_v61 = vpop.f32.mrb[27].mxu0  ;;  %1490 = vmatprep.subr.bf16.mxu1 %v1489_v34  ;;  %v920_v32 = vsel %vm919_vm4, %v2333_v48, %v918_v35  ;;  %vm942_vm11 = vcmp.eq.f32.partialorder %v2361_v17, 0.0  ;;  %v975_v35 = vld [vmem:[%s2518_s3 + $0x10] sm:$0xff]  ;;  %v977_v38 = vld [vmem:[%s2518_s3 + $0x20] sm:$0xff] }
 0x1a1   : > { %v1669_v37 = vpop.eup %1668  ;;  %v2365_v36 = vadd.f32 1e-06, %v841_v25  ;;  %v826_v41 = vmul.f32 %v782_v61, %v782_v61  ;;  %1492 = vmatpush3.bf16.xpose.msra.mxu1 %v1489_v34  ;;  %v923_v53 = vsel %vm921_vm6, %v922_v42, %v920_v32  ;;  %v974_v34 = vld [vmem:[%s2518_s3 + $0x8] sm:$0xff]  ;;  %v976_v25 = vld [vmem:[%s2518_s3 + $0x18] sm:$0xff]  ;;  %v979_v61 = vld [vmem:[%s2518_s3 + $0x30] sm:$0xff] }
 0x1a2   : > { %v925_v44 = vmul.f32 %v1669_v37, %v2345_v6  ;;  %v980_v37 = vld [vmem:[%s2518_s3 + $0x38] sm:$0xff]  ;;  %v983_v32 = vld [vmem:[%s2518_s3 + $0x50] sm:$0xff] }
 0x1a3   : > { %1674 = vrsqrt.f32 %v2365_v36  ;;  %v842_v45 = vadd.f32 %v826_v41, %v810_v40  ;;  %v786_v46 = vpop.f32.mrb[28].mxu0  ;;  %vm947_vm12 = vcmp.eq.f32.partialorder %v2365_v36, inf  ;;  %v950_v12 = vand.u32 2147483648, %v2365_v36  ;;  %v978_v40 = vld [vmem:[%s2518_s3 + $0x28] sm:$0xff]  ;;  %v984_v42 = vld [vmem:[%s2518_s3 + $0x58] sm:$0xff] }
 0x1a4   : > { %v811_v47 = vmul.f32 %v786_v46, %v786_v46  ;;  %v788_v50 = vpop.f32.mrb[29].mxu0  ;;  %v927_v43 = vsel %vm926_vm5, %v2345_v6, %v925_v44  ;;  %vm949_vm14 = vcmp.eq.f32.partialorder %v2365_v36, 0.0  ;;  %v982_v41 = vld [vmem:[%s2518_s3 + $0x48] sm:$0xff]  ;;  %v985_v44 = vld [vmem:[%s2518_s3 + $0x60] sm:$0xff]  ;;  %v987_v46 = vld [vmem:[%s2518_s3 + $0x70] sm:$0xff] }
 0x1a5   : > { %v1671_v51 = vpop.eup %1670  ;;  %v858_v52 = vadd.f32 1e-06, %v842_v45  ;;  %v827_v57 = vmul.f32 %v788_v50, %v788_v50  ;;  %v930_v54 = vsel %vm928_vm7, %v929_v39, %v927_v43  ;;  %v986_v45 = vld [vmem:[%s2518_s3 + $0x68] sm:$0xff]  ;;  %v988_v39 = vld [vmem:[%s2518_s3 + $0x78] sm:$0xff] }
 0x1a6   : > { %v1493_v55 = vpack.c.bf16 %v930_v54, %v923_v53  ;;  %v932_v56 = vmul.f32 %v1671_v51, %v2349_v15 }
 0x1a7   : > { %1676 = vrsqrt.f32 %v858_v52  ;;  %v843_v58 = vadd.f32 %v827_v57, %v811_v47  ;;  %v792_v59 = vpop.f32.mrb[30].mxu0  ;;  %vm954_vm13 = vcmp.eq.f32.partialorder %v858_v52, inf  ;;  %vm956_vm15 = vcmp.eq.f32.partialorder %v858_v52, 0.0 }
 0x1a8   : > { %v812_v62 = vmul.f32 %v792_v59, %v792_v59  ;;  %v794_v63 = vpop.f32.mrb[31].mxu0  ;;  %1494 = vmatprep.subr.bf16.mxu1 %v1493_v55  ;;  %v934_v49 = vsel %vm933_vm8, %v2349_v15, %v932_v56  ;;  %v957_v15 = vand.u32 2147483648, %v858_v52 }
 0x1a9   : > { %v1673_v0 = vpop.eup %1672  ;;  %v859_v48 = vadd.f32 1e-06, %v843_v58  ;;  %v828_v1 = vmul.f32 %v794_v63, %v794_v63  ;;  %1496 = vmatpush3.bf16.xpose.msra.mxu1 %v1493_v55  ;;  %v937_v8 = vsel %vm935_vm10, %v936_v2, %v934_v49 }
 0x1aa   : > { %v939_v3 = vmul.f32 %v1673_v0, %v2361_v17 }
 0x1ab   : > { %1678 = vrsqrt.f32 %v859_v48  ;;  %v844_v21 = vadd.f32 %v828_v1, %v812_v62  ;;  %vm961_vm0 = vcmp.eq.f32.partialorder %v859_v48, inf  ;;  %v964_v28 = vand.u32 2147483648, %v859_v48 }
 0x1ac   : > { %v941_v6 = vsel %vm940_vm9, %v2361_v17, %v939_v3  ;;  %vm963_vm2 = vcmp.eq.f32.partialorder %v859_v48, 0.0 }
 0x1ad   : > { %v1675_v7 = vpop.eup %1674  ;;  %v860_v60 = vadd.f32 1e-06, %v844_v21  ;;  %v944_v9 = vsel %vm942_vm11, %v943_v5, %v941_v6 }
 0x1ae   : > { %v1497_v10 = vpack.c.bf16 %v944_v9, %v937_v8  ;;  %v946_v13 = vmul.f32 %v1675_v7, %v2365_v36 }
 0x1af   : > { %1680 = vrsqrt.f32 %v860_v60  ;;  %vm968_vm1 = vcmp.eq.f32.partialorder %v860_v60, inf  ;;  %v971_v29 = vand.u32 2147483648, %v860_v60  ;;  %vm970_vm3 = vcmp.eq.f32.partialorder %v860_v60, 0.0 }
 0x1b0   : > { %1498 = vmatprep.subr.bf16.mxu1 %v1497_v10  ;;  %v948_v4 = vsel %vm947_vm12, %v2365_v36, %v946_v13  ;;  %v981_v36 = vld [vmem:[%s2518_s3 + $0x40] sm:$0xff] }
 0x1b1   : > { %v1677_v14 = vpop.eup %1676  ;;  %1500 = vmatpush3.bf16.xpose.msra.mxu1 %v1497_v10  ;;  %v951_v19 = vsel %vm949_vm14, %v950_v12, %v948_v4 }
 0x1b2   : > { %v953_v22 = vmul.f32 %v1677_v14, %v858_v52 }
 0x1b4   : > { %v955_v16 = vsel %vm954_vm13, %v858_v52, %v953_v22 }
 0x1b5   : > { %v1679_v18 = vpop.eup %1678  ;;  %v958_v20 = vsel %vm956_vm15, %v957_v15, %v955_v16 }
 0x1b6   : > { %v1501_v11 = vpack.c.bf16 %v958_v20, %v951_v19  ;;  %v960_v24 = vmul.f32 %v1679_v18, %v859_v48 }
 0x1b8   : > { %1502 = vmatprep.subr.bf16.mxu1 %v1501_v11  ;;  %v962_v26 = vsel %vm961_vm0, %v859_v48, %v960_v24 }
 0x1b9   : > { %v1681_v23 = vpop.eup %1680  ;;  %1504 = vmatpush3.bf16.xpose.msra.mxu1 %v1501_v11  ;;  %v965_v30 = vsel %vm963_vm2, %v964_v28, %v962_v26 }
 0x1ba   : > { %v967_v27 = vmul.f32 %v1681_v23, %v860_v60 }
 0x1bc   : > { %v969_v17 = vsel %vm968_vm1, %v860_v60, %v967_v27 }
 0x1bd   : > { %v972_v33 = vsel %vm970_vm3, %v971_v29, %v969_v17 }
 0x1be   : > { %v1505_v31 = vpack.c.bf16 %v972_v33, %v965_v30 }
 0x1c0   : > { %1506 = vmatprep.subr.bf16.mxu1 %v1505_v31 }
 0x1c1   : > { %1508 = vmatpush3.bf16.xpose.msra.mxu1 %v1505_v31 }
 0x1c8   : > { %1390 = vmatmul.mubr.f32.vlgmr.msra.gmra.mrb[0].mxu1 %v974_v34 }
 0x1c9   : > { %1392 = vmatprep.mubr.f32.mxu1 %v975_v35 }
 0x1cc   : > { %1393 = vmatmul.mubr.f32.gmra.mrb[2].mxu1 %v976_v25 }
 0x1cd   : > { %1395 = vmatprep.mubr.f32.mxu1 %v977_v38 }
 0x1d0   : > { %1396 = vmatmul.mubr.f32.gmra.mrb[4].mxu1 %v978_v40 }
 0x1d1   : > { %1398 = vmatprep.mubr.f32.mxu1 %v979_v61 }
 0x1d4   : > { %1399 = vmatmul.mubr.f32.gmra.mrb[6].mxu1 %v980_v37 }
 0x1d5   : > { %1401 = vmatprep.mubr.f32.mxu1 %v981_v36 }
 0x1d8   : > { %1402 = vmatmul.mubr.f32.gmra.mrb[8].mxu1 %v982_v41 }
 0x1d9   : > { %1404 = vmatprep.mubr.f32.mxu1 %v983_v32 }
 0x1dc   : > { %1405 = vmatmul.mubr.f32.gmra.mrb[10].mxu1 %v984_v42 }
 0x1dd   : > { %1407 = vmatprep.mubr.f32.mxu1 %v985_v44 }
 0x1e0   : > { %1408 = vmatmul.mubr.f32.gmra.mrb[12].mxu1 %v986_v45 }
 0x1e1   : > { %1410 = vmatprep.mubr.f32.mxu1 %v987_v46 }
 0x1e4   : > { %1411 = vmatmul.mubr.f32.gmra.mrb[14].mxu1 %v988_v39 }
 0x29b   : > { %v1391_v47 = vpop.f32.mrb[0].mxu1 }
 0x29c   : > { %v1135_v50 = vmax.f32 %v1391_v47, 1e-05  ;;  %v1055_v43 = vpop.f32.mrb[1].mxu1 }
 0x29d   : > { %v1134_v51 = vmax.f32 %v1055_v43, 1e-05 }
 0x29e   : > { %1682 = vlog2.f32 %v1135_v50 }
 0x29f   : > { %1684 = vlog2.f32 %v1134_v51  ;;  %v1394_v52 = vpop.f32.mrb[2].mxu1 }
 0x2a0   : > { %v1137_v57 = vmax.f32 %v1394_v52, 1e-05  ;;  %v1065_v53 = vpop.f32.mrb[3].mxu1 }
 0x2a1   : > { %v1136_v54 = vmax.f32 %v1065_v53, 1e-05 }
 0x2a2   : > { %1686 = vlog2.f32 %v1137_v57 }
 0x2a3   : > { %1688 = vlog2.f32 %v1136_v54  ;;  %v1397_v55 = vpop.f32.mrb[4].mxu1 }
 0x2a4   : > { %v1139_v56 = vmax.f32 %v1397_v55, 1e-05  ;;  %v1075_v58 = vpop.f32.mrb[5].mxu1 }
 0x2a5   : > { %v1138_v59 = vmax.f32 %v1075_v58, 1e-05 }
 0x2a6   : > { %1690 = vlog2.f32 %v1139_v56 }
 0x2a7   : > { %1692 = vlog2.f32 %v1138_v59  ;;  %v1400_v62 = vpop.f32.mrb[6].mxu1 }
 0x2a8   : > { %v1683_v63 = vpop.eup %1682  ;;  %v1141_v0 = vmax.f32 %v1400_v62, 1e-05  ;;  %v1085_v48 = vpop.f32.mrb[7].mxu1 }
 0x2a9   : > { %v1685_v1 = vpop.eup %1684  ;;  %v1153_v49 = vmul.f32 0.6931472, %v1683_v63  ;;  %v1140_v2 = vmax.f32 %v1085_v48, 1e-05 }
 0x2aa   : > { %v1151_v3 = vmul.f32 0.6931472, %v1685_v1  ;;  %1694 = vlog2.f32 %v1141_v0 }
 0x2ab   : > { %1183 = vst [vmem:[%s2440_s13 + $0x8] sm:$0xff] %v1153_v49  ;;  %1696 = vlog2.f32 %v1140_v2  ;;  %v1403_v21 = vpop.f32.mrb[8].mxu1 }
 0x2ac   : > { %v1687_v5 = vpop.eup %1686  ;;  %1182 = vst [vmem:[%s2440_s13] sm:$0xff] %v1151_v3  ;;  %v1143_v6 = vmax.f32 %v1403_v21, 1e-05  ;;  %v1095_v7 = vpop.f32.mrb[9].mxu1 }
 0x2ad   : > { %v1689_v60 = vpop.eup %1688  ;;  %v1157_v8 = vmul.f32 0.6931472, %v1687_v5  ;;  %v1142_v9 = vmax.f32 %v1095_v7, 1e-05 }
 0x2ae   : > { %v1155_v10 = vmul.f32 0.6931472, %v1689_v60  ;;  %1698 = vlog2.f32 %v1143_v6 }
 0x2af   : > { %1185 = vst [vmem:[%s2440_s13 + $0x18] sm:$0xff] %v1157_v8  ;;  %1700 = vlog2.f32 %v1142_v9  ;;  %v1406_v13 = vpop.f32.mrb[10].mxu1 }
 0x2b0   : > { %v1691_v14 = vpop.eup %1690  ;;  %1184 = vst [vmem:[%s2440_s13 + $0x10] sm:$0xff] %v1155_v10  ;;  %v1145_v4 = vmax.f32 %v1406_v13, 1e-05  ;;  %v1105_v22 = vpop.f32.mrb[11].mxu1 }
 0x2b1   : > { %v1693_v12 = vpop.eup %1692  ;;  %v1161_v15 = vmul.f32 0.6931472, %v1691_v14  ;;  %v1144_v16 = vmax.f32 %v1105_v22, 1e-05 }
 0x2b2   : > { %v1159_v18 = vmul.f32 0.6931472, %v1693_v12  ;;  %1702 = vlog2.f32 %v1145_v4 }
 0x2b3   : > { %1187 = vst [vmem:[%s2440_s13 + $0x28] sm:$0xff] %v1161_v15  ;;  %1704 = vlog2.f32 %v1144_v16  ;;  %v1409_v19 = vpop.f32.mrb[12].mxu1 }
 0x2b4   : > { %v1695_v20 = vpop.eup %1694  ;;  %1186 = vst [vmem:[%s2440_s13 + $0x20] sm:$0xff] %v1159_v18  ;;  %v1147_v11 = vmax.f32 %v1409_v19, 1e-05  ;;  %v1115_v24 = vpop.f32.mrb[13].mxu1 }
 0x2b5   : > { %v1697_v23 = vpop.eup %1696  ;;  %v1165_v26 = vmul.f32 0.6931472, %v1695_v20  ;;  %v1146_v27 = vmax.f32 %v1115_v24, 1e-05 }
 0x2b6   : > { %v1163_v28 = vmul.f32 0.6931472, %v1697_v23  ;;  %1706 = vlog2.f32 %v1147_v11 }
 0x2b7   : > { %1189 = vst [vmem:[%s2440_s13 + $0x38] sm:$0xff] %v1165_v26  ;;  %1708 = vlog2.f32 %v1146_v27  ;;  %v1412_v29 = vpop.f32.mrb[14].mxu1 }
 0x2b8   : > { %v1699_v17 = vpop.eup %1698  ;;  %1188 = vst [vmem:[%s2440_s13 + $0x30] sm:$0xff] %v1163_v28  ;;  %v1149_v30 = vmax.f32 %v1412_v29, 1e-05  ;;  %v1125_v33 = vpop.f32.mrb[15].mxu1 }
 0x2b9   : > { %v1701_v31 = vpop.eup %1700  ;;  %v1169_v34 = vmul.f32 0.6931472, %v1699_v17  ;;  %v1148_v35 = vmax.f32 %v1125_v33, 1e-05 }
 0x2ba   : > { %v1167_v25 = vmul.f32 0.6931472, %v1701_v31  ;;  %1710 = vlog2.f32 %v1149_v30 }
 0x2bb   : > { %1191 = vst [vmem:[%s2440_s13 + $0x48] sm:$0xff] %v1169_v34  ;;  %1712 = vlog2.f32 %v1148_v35 }
 0x2bc   : > { %v1703_v38 = vpop.eup %1702  ;;  %1190 = vst [vmem:[%s2440_s13 + $0x40] sm:$0xff] %v1167_v25 }
 0x2bd   : > { %v1705_v40 = vpop.eup %1704  ;;  %v1173_v61 = vmul.f32 0.6931472, %v1703_v38 }
 0x2be   : > { %v1171_v37 = vmul.f32 0.6931472, %v1705_v40 }
 0x2bf   : > { %1193 = vst [vmem:[%s2440_s13 + $0x58] sm:$0xff] %v1173_v61 }
 0x2c0   : > { %v1707_v36 = vpop.eup %1706  ;;  %1192 = vst [vmem:[%s2440_s13 + $0x50] sm:$0xff] %v1171_v37 }
 0x2c1   : > { %v1709_v41 = vpop.eup %1708  ;;  %v1177_v32 = vmul.f32 0.6931472, %v1707_v36 }
 0x2c2   : > { %v1175_v42 = vmul.f32 0.6931472, %v1709_v41 }
 0x2c3   : > { %1195 = vst [vmem:[%s2440_s13 + $0x68] sm:$0xff] %v1177_v32 }
 0x2c4   : > { %v1711_v44 = vpop.eup %1710  ;;  %1194 = vst [vmem:[%s2440_s13 + $0x60] sm:$0xff] %v1175_v42 }
 0x2c5   : > { %v1713_v45 = vpop.eup %1712  ;;  %v1181_v46 = vmul.f32 0.6931472, %v1711_v44 }
 0x2c6   : > { %v1179_v39 = vmul.f32 0.6931472, %v1713_v45 }
 0x2c7   : > { %1197 = vst [vmem:[%s2440_s13 + $0x78] sm:$0xff] %v1181_v46 }
 0x2c8   : > { %1196 = vst [vmem:[%s2440_s13 + $0x70] sm:$0xff] %v1179_v39 }
 0x2c9   : > { %1727 = shalt.err (!%p1724_p5)
}
 0x2ca   : > { %s1728_s29 = scalar_lea.hbm %s2461_s11, 2048  ;;  %s1732_s26 = scalar_lea.hbm %s2519_s4, 4096 }
 0x2cb   : > { %p1729_p6 = scmp.ne.s32.totalorder %s2461_s11, %s1728_s29  ;;  %p1733_p10 = scmp.lt.u32.totalorder %s2461_s11, %s2519_s4 }
 0x2cc   : > { %p1734_p11 = scmp.lt.u32.totalorder %s1732_s26, %s1728_s29  ;;  %p1736_p13 = scmp.lt.u32.totalorder %s1728_s29, %s2461_s11 }
 0x2cd   : > { %p1730_p7 = pnand %p1729_p6, %p1863_p4 }
 0x2ce   : > { %p1735_p12 = por %p1734_p11, %p1733_p10 }
 0x2cf   : > { %p1731_p9 = pneg %p1730_p7 }
 0x2d0   : > { %p1737_p0 = por %p1736_p13, %p1735_p12 }
 0x2d2   : > { %p1738_p1 = pnand %p1737_p0, %p1731_p9 }
 0x2d4   : > { %1741 = shalt.err (!%p1738_p1)
}
 0x2d5   : > { %s1796_s13 = smov 128   ;;  %s1797_s10 = smov 8  }
 0x2d6   : > { %1511 = dma.vmem_to_hbm [thread:$0]  (%p1863_p4), %s2463_s6, 2048, %s2461_s11, %s2469_s18, %s1796_s13, %s1796_s13, %s1797_s10  }
 0x2d7 PF: > { %p1518_p2 = scmp.ge.s32.totalorder %s1792_s20, 2  ;;  %s1228_s9 = sand.u32 1, %s1772_s15  }
 0x2d8   : > { %s1229_s8 = scalar_lea.sflag [#allocation3], %s1228_s9 }
 0x2d9   : > { %p1514_p3 = pnand %p1518_p2, %p1870_p8 }
 0x2db   : > { %1767 = dma.done.wait (!%p1514_p3), %s1229_s8, 2048  }
 0x2dc   : > { %1769 = vsyncadd (!%p1514_p3), %s1229_s8, 4294965248  ;;  %s17_s20 = sadd.s32 1, %s1792_s20   ;;  %s2522_s15 = smov %s1776_s16 }
 0x2dd   : > { %p14_p5 = scmp.ge.s32.totalorder %s17_s20, 4   ;;  %s2523_s16 = smov %s1780_s17 }
 0x2de   : > { %s2524_s17 = smov %s1876_s28  ;;  %s2525_s18 = smov %s1788_s19 }
 0x2df   : > { %s2526_s19 = smov %s2528_s23  ;;  %16 = sbr.rel (!%p14_p5) target bundleno = 4 (0x4), region = 74 }
 0x2e6   :  { %1234 = vsyncpa [#allocation3], 1 }
 0x2e7   :  { %1236 = vsyncpa [#allocation3 + $0x1], 1 }

</bundles_post_ra>
